<compile_context>
chip_gen: v6e
topology: v6e:2x2x1
jax: 0.10.0
libtpu: 0.0.40
codegen_flags: <defaults>
</compile_context>

<pallas_src>
import functools
import math

import jax
import jax.numpy as jnp
from jax.experimental import pallas as pl
from jax.experimental.pallas import tpu as pltpu

RELU_SLOPE = 0.1
EPS = 1e-5


def _leaky_relu(x, slope=RELU_SLOPE):
    return jnp.where(x >= 0, x, slope * x)


def _unet_conv_block_kernel(x_ref, mask_ref, w1_ref, b1_ref, gamma_ref,
                            beta_ref, w2_ref, b2_ref, wid_ref, bid_ref,
                            out_ref, padin_ref, pad2_ref, im1_ref, im2_ref,
                            *, H, W, Wp, B):
    # x_ref    : (B, Cin, H*W)    compact input (f32)
    # mask_ref : (1, HWp)         1.0 at valid output columns (x < W)
    # w1_ref   : (Cout, 9*Cin)    conv_1 weights, im2col order, bf16
    # w2_ref   : (Cout, 9*Cout)   conv_2 weights, im2col order, bf16
    # wid_ref  : (Cout, Cin)      1x1 identity conv, bf16
    # b*_ref   : (Cout, 1) f32 ;  gamma/beta : (Cout//2, 1) f32
    # out_ref  : (B, Cout, HWp)   output, spatial flattened as (H, Wp)
    # padin_ref: (Cin, Lp)  bf16  zero-padded conv_1 input (one image at a time)
    # pad2_ref : (Cout, Lp) bf16  zero-padded conv_2 input
    # im1_ref  : (9*Cin,  B*HWp) bf16   conv_1 im2col
    # im2_ref  : (9*Cout, B*HWp) bf16   conv_2 im2col
    HWp = H * Wp
    Cin = padin_ref.shape[0]
    Cout = pad2_ref.shape[0]
    C2 = Cout // 2
    Lp = padin_ref.shape[1]

    mask = mask_ref[...]                                   # (1, HWp) f32

    # Zero the pad positions once per grid step (per-step so a megacore split
    # of the batch grid axis stays correct); every image overwrites the same
    # interior, so the zeros remain valid for all B images of this step.
    padin_ref[...] = jnp.zeros((Cin, Lp), jnp.bfloat16)
    pad2_ref[:, 0:Wp + 1] = jnp.zeros((Cout, Wp + 1), jnp.bfloat16)
    pad2_ref[:, Wp + 1 + HWp:Lp] = jnp.zeros((Cout, Lp - (Wp + 1 + HWp)),
                                             jnp.bfloat16)

    # ------------- in-kernel pad + conv_1 im2col (bf16 operands) ------------
    for b in range(B):
        for y in range(H):
            padin_ref[:, (y + 1) * Wp + 1:(y + 1) * Wp + 1 + W] = (
                x_ref[b, :, y * W:(y + 1) * W].astype(jnp.bfloat16))
        for t in range(9):
            off = (t // 3) * Wp + (t % 3)                  # dy*Wp + dx
            im1_ref[t * Cin:(t + 1) * Cin, b * HWp:(b + 1) * HWp] = (
                padin_ref[:, off:off + HWp])

    # --------------- conv_1: one wide MXU dot over all B images -------------
    out1 = jnp.dot(w1_ref[...], im1_ref[...],
                   preferred_element_type=jnp.float32)
    out1 = out1 + b1_ref[...]                              # (Cout, B*HWp) f32

    # ----- HIN (per-image stats, two-pass masked var) + relu_1 + im2col -----
    inv_n = 1.0 / float(H * W)
    gamma = gamma_ref[...]
    beta = beta_ref[...]
    for b in range(B):
        o1 = out1[:, b * HWp:(b + 1) * HWp]                # (Cout, HWp)
        half = o1[:C2, :]
        mean = jnp.sum(half * mask, axis=1, keepdims=True) * inv_n
        cen = (half - mean) * mask
        var = jnp.sum(cen * cen, axis=1, keepdims=True) * inv_n   # biased
        norm = cen * (jax.lax.rsqrt(var + EPS) * gamma) + beta
        pad2_ref[0:C2, Wp + 1:Wp + 1 + HWp] = (
            (_leaky_relu(norm) * mask).astype(jnp.bfloat16))
        pad2_ref[C2:Cout, Wp + 1:Wp + 1 + HWp] = (
            (_leaky_relu(o1[C2:, :]) * mask).astype(jnp.bfloat16))
        for t in range(9):
            off = (t // 3) * Wp + (t % 3)
            im2_ref[t * Cout:(t + 1) * Cout, b * HWp:(b + 1) * HWp] = (
                pad2_ref[:, off:off + HWp])

    # --------------- conv_2: one wide MXU dot over all B images -------------
    out2 = jnp.dot(w2_ref[...], im2_ref[...],
                   preferred_element_type=jnp.float32)
    out2 = _leaky_relu(out2 + b2_ref[...])

    # ---- identity (1x1 conv): center im2col tap IS the (bf16) raw input ----
    ident = jnp.dot(wid_ref[...], im1_ref[4 * Cin:5 * Cin, :],
                    preferred_element_type=jnp.float32)
    ident = ident + bid_ref[...]

    res = (out2 + ident).astype(out_ref.dtype)             # (Cout, B*HWp)
    for b in range(B):
        out_ref[b] = res[:, b * HWp:(b + 1) * HWp]


def _round_up(v, m):
    return ((v + m - 1) // m) * m


def _step_vmem_bytes(b, Cin, Cout, H, W, HWp, Lp):
    im2col = 2 * (9 * Cin + 9 * Cout) * b * HWp            # bf16 scratch
    pads = 2 * (Cin + Cout) * Lp                            # bf16 pad buffers
    io = 2 * 4 * b * (Cin * H * W + Cout * HWp)             # dbl-buffered f32 I/O
    weights = 2 * Cout * (9 * Cin + 9 * Cout + Cin) + 4 * 4 * Cout
    return im2col + pads + io + weights


def unet_conv_block(x_nchw, params, max_b_tile=8):
    """x_nchw: (N, Cin, H, W) float32. Returns (N, Cout, H, W) (NCHW)."""
    w1, b1, gamma, beta, w2, b2, wid, bid = params
    N, Cin, H, W = x_nchw.shape
    Cout = w1.shape[-1]
    C2 = Cout // 2

    # Lane-dense flattened-spatial geometry: pad per-row width so the
    # flattened spatial axis H*Wp is a multiple of 128 lanes (unmasked vst).
    wstep = 128 // math.gcd(H, 128)
    Wp = _round_up(W + 2, wstep)
    HWp = H * Wp
    Lp = (H + 3) * Wp          # 1 top pad row, 2 bottom rows (tap-slice headroom)

    # Batch tile: several images per grid step so the small (Cout x K) matmuls
    # get a wide lane dimension; capped by a conservative VMEM budget (v7x).
    budget = 40 * (1 << 20)
    b_tile = 1
    for d in range(1, min(N, max_b_tile) + 1):
        if N % d == 0 and _step_vmem_bytes(d, Cin, Cout, H, W, HWp, Lp) <= budget:
            b_tile = d

    x_flat = x_nchw.reshape(N, Cin, H * W)     # free reshape, no HBM pad copy

    # Column p = y*Wp + x is a real output position iff x < W.
    mask = ((jnp.arange(HWp, dtype=jnp.int32) % Wp) < W)
    mask = mask.astype(jnp.float32).reshape(1, HWp)

    # One-time weight re-layouts (im2col order: tap-major, channel-minor);
    # MXU operands in bf16, elementwise params stay f32.
    w1r = jnp.transpose(w1, (3, 0, 1, 2)).reshape(Cout, 9 * Cin).astype(jnp.bfloat16)
    w2r = jnp.transpose(w2, (3, 0, 1, 2)).reshape(Cout, 9 * Cout).astype(jnp.bfloat16)
    widr = jnp.transpose(wid).astype(jnp.bfloat16)          # (Cout, Cin)
    b1r = b1.reshape(Cout, 1).astype(jnp.float32)
    b2r = b2.reshape(Cout, 1).astype(jnp.float32)
    bidr = bid.reshape(Cout, 1).astype(jnp.float32)
    gammar = gamma.reshape(C2, 1).astype(jnp.float32)
    betar = beta.reshape(C2, 1).astype(jnp.float32)

    def full_spec(shape):
        return pl.BlockSpec(shape, lambda n: (0,) * len(shape))

    kernel = functools.partial(_unet_conv_block_kernel, H=H, W=W, Wp=Wp, B=b_tile)

    step_bytes = _step_vmem_bytes(b_tile, Cin, Cout, H, W, HWp, Lp)
    vmem_limit = int(min(64 * (1 << 20), max(8 * (1 << 20), 2 * step_bytes + (2 << 20))))

    out = pl.pallas_call(
        kernel,
        out_shape=jax.ShapeDtypeStruct((N, Cout, HWp), x_nchw.dtype),
        grid_spec=pltpu.PrefetchScalarGridSpec(
            num_scalar_prefetch=0,
            grid=(N // b_tile,),
            in_specs=[
                pl.BlockSpec((b_tile, Cin, H * W), lambda n: (n, 0, 0)),
                full_spec((1, HWp)),
                full_spec(w1r.shape),
                full_spec(b1r.shape),
                full_spec(gammar.shape),
                full_spec(betar.shape),
                full_spec(w2r.shape),
                full_spec(b2r.shape),
                full_spec(widr.shape),
                full_spec(bidr.shape),
            ],
            out_specs=pl.BlockSpec((b_tile, Cout, HWp), lambda n: (n, 0, 0)),
            scratch_shapes=[
                pltpu.VMEM((Cin, Lp), jnp.bfloat16),              # padded input
                pltpu.VMEM((Cout, Lp), jnp.bfloat16),             # conv_2 pad buf
                pltpu.VMEM((9 * Cin, b_tile * HWp), jnp.bfloat16),   # conv_1 im2col
                pltpu.VMEM((9 * Cout, b_tile * HWp), jnp.bfloat16),  # conv_2 im2col
            ],
        ),
        compiler_params=pltpu.CompilerParams(
            dimension_semantics=("parallel",),
            vmem_limit_bytes=vmem_limit,
        ),
    )(x_flat, mask, w1r, b1r, gammar, betar, w2r, b2r, widr, bidr)

    # Drop the pad columns; result is already NCHW -- no transposes.
    return out.reshape(N, Cout, H, Wp)[:, :, :, :W]


def init_params(key, in_size, out_size):
    """Deterministic synthetic parameters (shapes match the nn.Module)."""
    ks = jax.random.split(key, 8)
    scale = 0.1
    # conv weights stored as (kh, kw, Cin, Cout).
    w1 = scale * jax.random.normal(ks[0], (3, 3, in_size, out_size), jnp.float32)
    b1 = scale * jax.random.normal(ks[1], (out_size,), jnp.float32)
    gamma = 1.0 + scale * jax.random.normal(ks[2], (out_size // 2,), jnp.float32)
    beta = scale * jax.random.normal(ks[3], (out_size // 2,), jnp.float32)
    w2 = scale * jax.random.normal(ks[4], (3, 3, out_size, out_size), jnp.float32)
    b2 = scale * jax.random.normal(ks[5], (out_size,), jnp.float32)
    wid = scale * jax.random.normal(ks[6], (in_size, out_size), jnp.float32)
    bid = scale * jax.random.normal(ks[7], (out_size,), jnp.float32)
    return (w1, b1, gamma, beta, w2, b2, wid, bid)


def _reference(x_nchw, params):
    """Pure-JAX reference mirroring the module; conv operands in bf16 with f32
    accumulation, to match the kernel's MXU dtype choice."""
    w1, b1, gamma, beta, w2, b2, wid, bid = params

    def conv3x3(x, w, b):  # x NCHW f32, w (kh,kw,Cin,Cout)
        wk = jnp.transpose(w, (3, 2, 0, 1)).astype(jnp.bfloat16)  # OIHW
        y = jax.lax.conv_general_dilated(
            x.astype(jnp.bfloat16), wk, (1, 1), ((1, 1), (1, 1)),
            dimension_numbers=("NCHW", "OIHW", "NCHW"),
            preferred_element_type=jnp.float32)
        return y + b.reshape(1, -1, 1, 1)

    out = conv3x3(x_nchw, w1, b1)
    c2 = out.shape[1] // 2
    o1, o2 = out[:, :c2], out[:, c2:]
    mean = jnp.mean(o1, axis=(2, 3), keepdims=True)
    var = jnp.mean((o1 - mean) ** 2, axis=(2, 3), keepdims=True)
    o1 = (o1 - mean) * jax.lax.rsqrt(var + EPS) * gamma.reshape(1, -1, 1, 1) \
        + beta.reshape(1, -1, 1, 1)
    out = jnp.concatenate([o1, o2], axis=1)
    out = _leaky_relu(out)
    out = _leaky_relu(conv3x3(out, w2, b2))
    wid_k = jnp.transpose(wid.reshape(1, 1, *wid.shape), (3, 2, 0, 1)).astype(jnp.bfloat16)
    ident = jax.lax.conv_general_dilated(
        x_nchw.astype(jnp.bfloat16), wid_k, (1, 1), ((0, 0), (0, 0)),
        dimension_numbers=("NCHW", "OIHW", "NCHW"),
        preferred_element_type=jnp.float32) + bid.reshape(1, -1, 1, 1)
    return out + ident


if __name__ == "__main__":
    N, Cin, Cout, H, W = 2, 4, 8, 16, 16
    key = jax.random.PRNGKey(0)
    kx, kp = jax.random.split(key)
    x = jax.random.normal(kx, (N, Cin, H, W), jnp.float32)
    params = init_params(kp, Cin, Cout)

    y = unet_conv_block(x, params)
    y = jax.block_until_ready(y)

    y_ref = _reference(x, params)
    assert y.shape == (N, Cout, H, W)
    err = float(jnp.max(jnp.abs(y - y_ref)))
    # bf16 MXU operands => loosened tolerance (per review); structural bugs
    # would show errors >> 0.05.
    assert err < 5e-2, f"mismatch vs reference: {err}"
    print("KERNEL_OK")
</pallas_src>

<mosaic_0001>
module attributes {stable_mosaic.version = 11 : i64} {
  func.func @_unet_conv_block_kernel(%arg0: i32, %arg1: memref<2x4x256xf32, #tpu.memory_space<vmem>>, %arg2: memref<1x384xf32, #tpu.memory_space<vmem>>, %arg3: memref<8x36xbf16, #tpu.memory_space<vmem>>, %arg4: memref<8x1xf32, #tpu.memory_space<vmem>>, %arg5: memref<4x1xf32, #tpu.memory_space<vmem>>, %arg6: memref<4x1xf32, #tpu.memory_space<vmem>>, %arg7: memref<8x72xbf16, #tpu.memory_space<vmem>>, %arg8: memref<8x1xf32, #tpu.memory_space<vmem>>, %arg9: memref<8x4xbf16, #tpu.memory_space<vmem>>, %arg10: memref<8x1xf32, #tpu.memory_space<vmem>>, %arg11: memref<2x8x384xf32, #tpu.memory_space<vmem>>, %arg12: memref<4x456xbf16, #tpu.memory_space<vmem>>, %arg13: memref<8x456xbf16, #tpu.memory_space<vmem>>, %arg14: memref<36x768xbf16, #tpu.memory_space<vmem>>, %arg15: memref<72x768xbf16, #tpu.memory_space<vmem>>) attributes {dimension_semantics = [#tpu.dimension_semantics<parallel>], iteration_bounds = array<i64: 1>, scalar_prefetch = 0 : i64, scratch_operands = 4 : i64, tpu.core_type = #tpu.core_type<tc>, window_params = [{transform_indices = @transform_0, window_bounds = array<i64: 2, 4, 256>}, {pipeline_mode = #tpu.pipeline_mode<synchronous>, transform_indices = @transform_1, window_bounds = array<i64: 1, 384>}, {pipeline_mode = #tpu.pipeline_mode<synchronous>, transform_indices = @transform_2, window_bounds = array<i64: 8, 36>}, {pipeline_mode = #tpu.pipeline_mode<synchronous>, transform_indices = @transform_3, window_bounds = array<i64: 8, 1>}, {pipeline_mode = #tpu.pipeline_mode<synchronous>, transform_indices = @transform_4, window_bounds = array<i64: 4, 1>}, {pipeline_mode = #tpu.pipeline_mode<synchronous>, transform_indices = @transform_5, window_bounds = array<i64: 4, 1>}, {pipeline_mode = #tpu.pipeline_mode<synchronous>, transform_indices = @transform_6, window_bounds = array<i64: 8, 72>}, {pipeline_mode = #tpu.pipeline_mode<synchronous>, transform_indices = @transform_7, window_bounds = array<i64: 8, 1>}, {pipeline_mode = #tpu.pipeline_mode<synchronous>, transform_indices = @transform_8, window_bounds = array<i64: 8, 4>}, {pipeline_mode = #tpu.pipeline_mode<synchronous>, transform_indices = @transform_9, window_bounds = array<i64: 8, 1>}, {transform_indices = @transform_10, window_bounds = array<i64: 2, 8, 384>}]} {
    %c0 = arith.constant 0 : index
    %c0_0 = arith.constant 0 : index
    %0 = vector.load %arg2[%c0, %c0_0] : memref<1x384xf32, #tpu.memory_space<vmem>>, vector<1x384xf32>
    %cst = arith.constant 0.000000e+00 : bf16
    %1 = vector.broadcast %cst : bf16 to vector<4x456xbf16>
    %c0_1 = arith.constant 0 : index
    %c0_2 = arith.constant 0 : index
    %2 = vector.load %arg12[%c0_1, %c0_2] : memref<4x456xbf16, #tpu.memory_space<vmem>>, vector<4x456xbf16>
    tpu.vector_store %arg12[%c0_1, %c0_2], %1 {strides = array<i32>} : memref<4x456xbf16, #tpu.memory_space<vmem>>, vector<4x456xbf16>,
    %cst_3 = arith.constant 0.000000e+00 : bf16
    %3 = vector.broadcast %cst_3 : bf16 to vector<8x25xbf16>
    %c0_4 = arith.constant 0 : index
    %c0_5 = arith.constant 0 : index
    %4 = vector.load %arg13[%c0_4, %c0_5] : memref<8x456xbf16, #tpu.memory_space<vmem>>, vector<8x25xbf16>
    tpu.vector_store %arg13[%c0_4, %c0_5], %3 {strides = array<i32>} : memref<8x456xbf16, #tpu.memory_space<vmem>>, vector<8x25xbf16>,
    %cst_6 = arith.constant 0.000000e+00 : bf16
    %5 = vector.broadcast %cst_6 : bf16 to vector<8x47xbf16>
    %c0_7 = arith.constant 0 : index
    %c409 = arith.constant 409 : index
    %6 = vector.load %arg13[%c0_7, %c409] : memref<8x456xbf16, #tpu.memory_space<vmem>>, vector<8x47xbf16>
    tpu.vector_store %arg13[%c0_7, %c409], %5 {strides = array<i32>} : memref<8x456xbf16, #tpu.memory_space<vmem>>, vector<8x47xbf16>,
    %c0_8 = arith.constant 0 : index
    %c0_9 = arith.constant 0 : index
    %c0_10 = arith.constant 0 : index
    %7 = vector.load %arg1[%c0_8, %c0_9, %c0_10] : memref<2x4x256xf32, #tpu.memory_space<vmem>>, vector<1x4x16xf32>
    %8 = vector.shape_cast %7 : vector<1x4x16xf32> to vector<4x16xf32>
    %9 = arith.truncf %8 : vector<4x16xf32> to vector<4x16xbf16>
    %c0_11 = arith.constant 0 : index
    %c25 = arith.constant 25 : index
    %10 = vector.load %arg12[%c0_11, %c25] : memref<4x456xbf16, #tpu.memory_space<vmem>>, vector<4x16xbf16>
    tpu.vector_store %arg12[%c0_11, %c25], %9 {strides = array<i32>} : memref<4x456xbf16, #tpu.memory_space<vmem>>, vector<4x16xbf16>,
    %c0_12 = arith.constant 0 : index
    %c0_13 = arith.constant 0 : index
    %c16 = arith.constant 16 : index
    %11 = vector.load %arg1[%c0_12, %c0_13, %c16] : memref<2x4x256xf32, #tpu.memory_space<vmem>>, vector<1x4x16xf32>
    %12 = vector.shape_cast %11 : vector<1x4x16xf32> to vector<4x16xf32>
    %13 = arith.truncf %12 : vector<4x16xf32> to vector<4x16xbf16>
    %c0_14 = arith.constant 0 : index
    %c49 = arith.constant 49 : index
    %14 = vector.load %arg12[%c0_14, %c49] : memref<4x456xbf16, #tpu.memory_space<vmem>>, vector<4x16xbf16>
    tpu.vector_store %arg12[%c0_14, %c49], %13 {strides = array<i32>} : memref<4x456xbf16, #tpu.memory_space<vmem>>, vector<4x16xbf16>,
    %c0_15 = arith.constant 0 : index
    %c0_16 = arith.constant 0 : index
    %c32 = arith.constant 32 : index
    %15 = vector.load %arg1[%c0_15, %c0_16, %c32] : memref<2x4x256xf32, #tpu.memory_space<vmem>>, vector<1x4x16xf32>
    %16 = vector.shape_cast %15 : vector<1x4x16xf32> to vector<4x16xf32>
    %17 = arith.truncf %16 : vector<4x16xf32> to vector<4x16xbf16>
    %c0_17 = arith.constant 0 : index
    %c73 = arith.constant 73 : index
    %18 = vector.load %arg12[%c0_17, %c73] : memref<4x456xbf16, #tpu.memory_space<vmem>>, vector<4x16xbf16>
    tpu.vector_store %arg12[%c0_17, %c73], %17 {strides = array<i32>} : memref<4x456xbf16, #tpu.memory_space<vmem>>, vector<4x16xbf16>,
    %c0_18 = arith.constant 0 : index
    %c0_19 = arith.constant 0 : index
    %c48 = arith.constant 48 : index
    %19 = vector.load %arg1[%c0_18, %c0_19, %c48] : memref<2x4x256xf32, #tpu.memory_space<vmem>>, vector<1x4x16xf32>
    %20 = vector.shape_cast %19 : vector<1x4x16xf32> to vector<4x16xf32>
    %21 = arith.truncf %20 : vector<4x16xf32> to vector<4x16xbf16>
    %c0_20 = arith.constant 0 : index
    %c97 = arith.constant 97 : index
    %22 = vector.load %arg12[%c0_20, %c97] : memref<4x456xbf16, #tpu.memory_space<vmem>>, vector<4x16xbf16>
    tpu.vector_store %arg12[%c0_20, %c97], %21 {strides = array<i32>} : memref<4x456xbf16, #tpu.memory_space<vmem>>, vector<4x16xbf16>,
    %c0_21 = arith.constant 0 : index
    %c0_22 = arith.constant 0 : index
    %c64 = arith.constant 64 : index
    %23 = vector.load %arg1[%c0_21, %c0_22, %c64] : memref<2x4x256xf32, #tpu.memory_space<vmem>>, vector<1x4x16xf32>
    %24 = vector.shape_cast %23 : vector<1x4x16xf32> to vector<4x16xf32>
    %25 = arith.truncf %24 : vector<4x16xf32> to vector<4x16xbf16>
    %c0_23 = arith.constant 0 : index
    %c121 = arith.constant 121 : index
    %26 = vector.load %arg12[%c0_23, %c121] : memref<4x456xbf16, #tpu.memory_space<vmem>>, vector<4x16xbf16>
    tpu.vector_store %arg12[%c0_23, %c121], %25 {strides = array<i32>} : memref<4x456xbf16, #tpu.memory_space<vmem>>, vector<4x16xbf16>,
    %c0_24 = arith.constant 0 : index
    %c0_25 = arith.constant 0 : index
    %c80 = arith.constant 80 : index
    %27 = vector.load %arg1[%c0_24, %c0_25, %c80] : memref<2x4x256xf32, #tpu.memory_space<vmem>>, vector<1x4x16xf32>
    %28 = vector.shape_cast %27 : vector<1x4x16xf32> to vector<4x16xf32>
    %29 = arith.truncf %28 : vector<4x16xf32> to vector<4x16xbf16>
    %c0_26 = arith.constant 0 : index
    %c145 = arith.constant 145 : index
    %30 = vector.load %arg12[%c0_26, %c145] : memref<4x456xbf16, #tpu.memory_space<vmem>>, vector<4x16xbf16>
    tpu.vector_store %arg12[%c0_26, %c145], %29 {strides = array<i32>} : memref<4x456xbf16, #tpu.memory_space<vmem>>, vector<4x16xbf16>,
    %c0_27 = arith.constant 0 : index
    %c0_28 = arith.constant 0 : index
    %c96 = arith.constant 96 : index
    %31 = vector.load %arg1[%c0_27, %c0_28, %c96] : memref<2x4x256xf32, #tpu.memory_space<vmem>>, vector<1x4x16xf32>
    %32 = vector.shape_cast %31 : vector<1x4x16xf32> to vector<4x16xf32>
    %33 = arith.truncf %32 : vector<4x16xf32> to vector<4x16xbf16>
    %c0_29 = arith.constant 0 : index
    %c169 = arith.constant 169 : index
    %34 = vector.load %arg12[%c0_29, %c169] : memref<4x456xbf16, #tpu.memory_space<vmem>>, vector<4x16xbf16>
    tpu.vector_store %arg12[%c0_29, %c169], %33 {strides = array<i32>} : memref<4x456xbf16, #tpu.memory_space<vmem>>, vector<4x16xbf16>,
    %c0_30 = arith.constant 0 : index
    %c0_31 = arith.constant 0 : index
    %c112 = arith.constant 112 : index
    %35 = vector.load %arg1[%c0_30, %c0_31, %c112] : memref<2x4x256xf32, #tpu.memory_space<vmem>>, vector<1x4x16xf32>
    %36 = vector.shape_cast %35 : vector<1x4x16xf32> to vector<4x16xf32>
    %37 = arith.truncf %36 : vector<4x16xf32> to vector<4x16xbf16>
    %c0_32 = arith.constant 0 : index
    %c193 = arith.constant 193 : index
    %38 = vector.load %arg12[%c0_32, %c193] : memref<4x456xbf16, #tpu.memory_space<vmem>>, vector<4x16xbf16>
    tpu.vector_store %arg12[%c0_32, %c193], %37 {strides = array<i32>} : memref<4x456xbf16, #tpu.memory_space<vmem>>, vector<4x16xbf16>,
    %c0_33 = arith.constant 0 : index
    %c0_34 = arith.constant 0 : index
    %c128 = arith.constant 128 : index
    %39 = vector.load %arg1[%c0_33, %c0_34, %c128] : memref<2x4x256xf32, #tpu.memory_space<vmem>>, vector<1x4x16xf32>
    %40 = vector.shape_cast %39 : vector<1x4x16xf32> to vector<4x16xf32>
    %41 = arith.truncf %40 : vector<4x16xf32> to vector<4x16xbf16>
    %c0_35 = arith.constant 0 : index
    %c217 = arith.constant 217 : index
    %42 = vector.load %arg12[%c0_35, %c217] : memref<4x456xbf16, #tpu.memory_space<vmem>>, vector<4x16xbf16>
    tpu.vector_store %arg12[%c0_35, %c217], %41 {strides = array<i32>} : memref<4x456xbf16, #tpu.memory_space<vmem>>, vector<4x16xbf16>,
    %c0_36 = arith.constant 0 : index
    %c0_37 = arith.constant 0 : index
    %c144 = arith.constant 144 : index
    %43 = vector.load %arg1[%c0_36, %c0_37, %c144] : memref<2x4x256xf32, #tpu.memory_space<vmem>>, vector<1x4x16xf32>
    %44 = vector.shape_cast %43 : vector<1x4x16xf32> to vector<4x16xf32>
    %45 = arith.truncf %44 : vector<4x16xf32> to vector<4x16xbf16>
    %c0_38 = arith.constant 0 : index
    %c241 = arith.constant 241 : index
    %46 = vector.load %arg12[%c0_38, %c241] : memref<4x456xbf16, #tpu.memory_space<vmem>>, vector<4x16xbf16>
    tpu.vector_store %arg12[%c0_38, %c241], %45 {strides = array<i32>} : memref<4x456xbf16, #tpu.memory_space<vmem>>, vector<4x16xbf16>,
    %c0_39 = arith.constant 0 : index
    %c0_40 = arith.constant 0 : index
    %c160 = arith.constant 160 : index
    %47 = vector.load %arg1[%c0_39, %c0_40, %c160] : memref<2x4x256xf32, #tpu.memory_space<vmem>>, vector<1x4x16xf32>
    %48 = vector.shape_cast %47 : vector<1x4x16xf32> to vector<4x16xf32>
    %49 = arith.truncf %48 : vector<4x16xf32> to vector<4x16xbf16>
    %c0_41 = arith.constant 0 : index
    %c265 = arith.constant 265 : index
    %50 = vector.load %arg12[%c0_41, %c265] : memref<4x456xbf16, #tpu.memory_space<vmem>>, vector<4x16xbf16>
    tpu.vector_store %arg12[%c0_41, %c265], %49 {strides = array<i32>} : memref<4x456xbf16, #tpu.memory_space<vmem>>, vector<4x16xbf16>,
    %c0_42 = arith.constant 0 : index
    %c0_43 = arith.constant 0 : index
    %c176 = arith.constant 176 : index
    %51 = vector.load %arg1[%c0_42, %c0_43, %c176] : memref<2x4x256xf32, #tpu.memory_space<vmem>>, vector<1x4x16xf32>
    %52 = vector.shape_cast %51 : vector<1x4x16xf32> to vector<4x16xf32>
    %53 = arith.truncf %52 : vector<4x16xf32> to vector<4x16xbf16>
    %c0_44 = arith.constant 0 : index
    %c289 = arith.constant 289 : index
    %54 = vector.load %arg12[%c0_44, %c289] : memref<4x456xbf16, #tpu.memory_space<vmem>>, vector<4x16xbf16>
    tpu.vector_store %arg12[%c0_44, %c289], %53 {strides = array<i32>} : memref<4x456xbf16, #tpu.memory_space<vmem>>, vector<4x16xbf16>,
    %c0_45 = arith.constant 0 : index
    %c0_46 = arith.constant 0 : index
    %c192 = arith.constant 192 : index
    %55 = vector.load %arg1[%c0_45, %c0_46, %c192] : memref<2x4x256xf32, #tpu.memory_space<vmem>>, vector<1x4x16xf32>
    %56 = vector.shape_cast %55 : vector<1x4x16xf32> to vector<4x16xf32>
    %57 = arith.truncf %56 : vector<4x16xf32> to vector<4x16xbf16>
    %c0_47 = arith.constant 0 : index
    %c313 = arith.constant 313 : index
    %58 = vector.load %arg12[%c0_47, %c313] : memref<4x456xbf16, #tpu.memory_space<vmem>>, vector<4x16xbf16>
    tpu.vector_store %arg12[%c0_47, %c313], %57 {strides = array<i32>} : memref<4x456xbf16, #tpu.memory_space<vmem>>, vector<4x16xbf16>,
    %c0_48 = arith.constant 0 : index
    %c0_49 = arith.constant 0 : index
    %c208 = arith.constant 208 : index
    %59 = vector.load %arg1[%c0_48, %c0_49, %c208] : memref<2x4x256xf32, #tpu.memory_space<vmem>>, vector<1x4x16xf32>
    %60 = vector.shape_cast %59 : vector<1x4x16xf32> to vector<4x16xf32>
    %61 = arith.truncf %60 : vector<4x16xf32> to vector<4x16xbf16>
    %c0_50 = arith.constant 0 : index
    %c337 = arith.constant 337 : index
    %62 = vector.load %arg12[%c0_50, %c337] : memref<4x456xbf16, #tpu.memory_space<vmem>>, vector<4x16xbf16>
    tpu.vector_store %arg12[%c0_50, %c337], %61 {strides = array<i32>} : memref<4x456xbf16, #tpu.memory_space<vmem>>, vector<4x16xbf16>,
    %c0_51 = arith.constant 0 : index
    %c0_52 = arith.constant 0 : index
    %c224 = arith.constant 224 : index
    %63 = vector.load %arg1[%c0_51, %c0_52, %c224] : memref<2x4x256xf32, #tpu.memory_space<vmem>>, vector<1x4x16xf32>
    %64 = vector.shape_cast %63 : vector<1x4x16xf32> to vector<4x16xf32>
    %65 = arith.truncf %64 : vector<4x16xf32> to vector<4x16xbf16>
    %c0_53 = arith.constant 0 : index
    %c361 = arith.constant 361 : index
    %66 = vector.load %arg12[%c0_53, %c361] : memref<4x456xbf16, #tpu.memory_space<vmem>>, vector<4x16xbf16>
    tpu.vector_store %arg12[%c0_53, %c361], %65 {strides = array<i32>} : memref<4x456xbf16, #tpu.memory_space<vmem>>, vector<4x16xbf16>,
    %c0_54 = arith.constant 0 : index
    %c0_55 = arith.constant 0 : index
    %c240 = arith.constant 240 : index
    %67 = vector.load %arg1[%c0_54, %c0_55, %c240] : memref<2x4x256xf32, #tpu.memory_space<vmem>>, vector<1x4x16xf32>
    %68 = vector.shape_cast %67 : vector<1x4x16xf32> to vector<4x16xf32>
    %69 = arith.truncf %68 : vector<4x16xf32> to vector<4x16xbf16>
    %c0_56 = arith.constant 0 : index
    %c385 = arith.constant 385 : index
    %70 = vector.load %arg12[%c0_56, %c385] : memref<4x456xbf16, #tpu.memory_space<vmem>>, vector<4x16xbf16>
    tpu.vector_store %arg12[%c0_56, %c385], %69 {strides = array<i32>} : memref<4x456xbf16, #tpu.memory_space<vmem>>, vector<4x16xbf16>,
    %c0_57 = arith.constant 0 : index
    %c0_58 = arith.constant 0 : index
    %71 = vector.load %arg12[%c0_57, %c0_58] : memref<4x456xbf16, #tpu.memory_space<vmem>>, vector<4x384xbf16>
    %c0_59 = arith.constant 0 : index
    %c0_60 = arith.constant 0 : index
    %72 = vector.load %arg14[%c0_59, %c0_60] : memref<36x768xbf16, #tpu.memory_space<vmem>>, vector<4x384xbf16>
    tpu.vector_store %arg14[%c0_59, %c0_60], %71 {strides = array<i32>} : memref<36x768xbf16, #tpu.memory_space<vmem>>, vector<4x384xbf16>,
    %c0_61 = arith.constant 0 : index
    %c1 = arith.constant 1 : index
    %73 = vector.load %arg12[%c0_61, %c1] : memref<4x456xbf16, #tpu.memory_space<vmem>>, vector<4x384xbf16>
    %c4 = arith.constant 4 : index
    %c0_62 = arith.constant 0 : index
    %74 = vector.load %arg14[%c4, %c0_62] : memref<36x768xbf16, #tpu.memory_space<vmem>>, vector<4x384xbf16>
    tpu.vector_store %arg14[%c4, %c0_62], %73 {strides = array<i32>} : memref<36x768xbf16, #tpu.memory_space<vmem>>, vector<4x384xbf16>,
    %c0_63 = arith.constant 0 : index
    %c2 = arith.constant 2 : index
    %75 = vector.load %arg12[%c0_63, %c2] : memref<4x456xbf16, #tpu.memory_space<vmem>>, vector<4x384xbf16>
    %c8 = arith.constant 8 : index
    %c0_64 = arith.constant 0 : index
    %76 = vector.load %arg14[%c8, %c0_64] : memref<36x768xbf16, #tpu.memory_space<vmem>>, vector<4x384xbf16>
    tpu.vector_store %arg14[%c8, %c0_64], %75 {strides = array<i32>} : memref<36x768xbf16, #tpu.memory_space<vmem>>, vector<4x384xbf16>,
    %c0_65 = arith.constant 0 : index
    %c24 = arith.constant 24 : index
    %77 = vector.load %arg12[%c0_65, %c24] : memref<4x456xbf16, #tpu.memory_space<vmem>>, vector<4x384xbf16>
    %c12 = arith.constant 12 : index
    %c0_66 = arith.constant 0 : index
    %78 = vector.load %arg14[%c12, %c0_66] : memref<36x768xbf16, #tpu.memory_space<vmem>>, vector<4x384xbf16>
    tpu.vector_store %arg14[%c12, %c0_66], %77 {strides = array<i32>} : memref<36x768xbf16, #tpu.memory_space<vmem>>, vector<4x384xbf16>,
    %c0_67 = arith.constant 0 : index
    %c25_68 = arith.constant 25 : index
    %79 = vector.load %arg12[%c0_67, %c25_68] : memref<4x456xbf16, #tpu.memory_space<vmem>>, vector<4x384xbf16>
    %c16_69 = arith.constant 16 : index
    %c0_70 = arith.constant 0 : index
    %80 = vector.load %arg14[%c16_69, %c0_70] : memref<36x768xbf16, #tpu.memory_space<vmem>>, vector<4x384xbf16>
    tpu.vector_store %arg14[%c16_69, %c0_70], %79 {strides = array<i32>} : memref<36x768xbf16, #tpu.memory_space<vmem>>, vector<4x384xbf16>,
    %c0_71 = arith.constant 0 : index
    %c26 = arith.constant 26 : index
    %81 = vector.load %arg12[%c0_71, %c26] : memref<4x456xbf16, #tpu.memory_space<vmem>>, vector<4x384xbf16>
    %c20 = arith.constant 20 : index
    %c0_72 = arith.constant 0 : index
    %82 = vector.load %arg14[%c20, %c0_72] : memref<36x768xbf16, #tpu.memory_space<vmem>>, vector<4x384xbf16>
    tpu.vector_store %arg14[%c20, %c0_72], %81 {strides = array<i32>} : memref<36x768xbf16, #tpu.memory_space<vmem>>, vector<4x384xbf16>,
    %c0_73 = arith.constant 0 : index
    %c48_74 = arith.constant 48 : index
    %83 = vector.load %arg12[%c0_73, %c48_74] : memref<4x456xbf16, #tpu.memory_space<vmem>>, vector<4x384xbf16>
    %c24_75 = arith.constant 24 : index
    %c0_76 = arith.constant 0 : index
    %84 = vector.load %arg14[%c24_75, %c0_76] : memref<36x768xbf16, #tpu.memory_space<vmem>>, vector<4x384xbf16>
    tpu.vector_store %arg14[%c24_75, %c0_76], %83 {strides = array<i32>} : memref<36x768xbf16, #tpu.memory_space<vmem>>, vector<4x384xbf16>,
    %c0_77 = arith.constant 0 : index
    %c49_78 = arith.constant 49 : index
    %85 = vector.load %arg12[%c0_77, %c49_78] : memref<4x456xbf16, #tpu.memory_space<vmem>>, vector<4x384xbf16>
    %c28 = arith.constant 28 : index
    %c0_79 = arith.constant 0 : index
    %86 = vector.load %arg14[%c28, %c0_79] : memref<36x768xbf16, #tpu.memory_space<vmem>>, vector<4x384xbf16>
    tpu.vector_store %arg14[%c28, %c0_79], %85 {strides = array<i32>} : memref<36x768xbf16, #tpu.memory_space<vmem>>, vector<4x384xbf16>,
    %c0_80 = arith.constant 0 : index
    %c50 = arith.constant 50 : index
    %87 = vector.load %arg12[%c0_80, %c50] : memref<4x456xbf16, #tpu.memory_space<vmem>>, vector<4x384xbf16>
    %c32_81 = arith.constant 32 : index
    %c0_82 = arith.constant 0 : index
    %88 = vector.load %arg14[%c32_81, %c0_82] : memref<36x768xbf16, #tpu.memory_space<vmem>>, vector<4x384xbf16>
    tpu.vector_store %arg14[%c32_81, %c0_82], %87 {strides = array<i32>} : memref<36x768xbf16, #tpu.memory_space<vmem>>, vector<4x384xbf16>,
    %c1_83 = arith.constant 1 : index
    %c0_84 = arith.constant 0 : index
    %c0_85 = arith.constant 0 : index
    %89 = vector.load %arg1[%c1_83, %c0_84, %c0_85] : memref<2x4x256xf32, #tpu.memory_space<vmem>>, vector<1x4x16xf32>
    %90 = vector.shape_cast %89 : vector<1x4x16xf32> to vector<4x16xf32>
    %91 = arith.truncf %90 : vector<4x16xf32> to vector<4x16xbf16>
    %c0_86 = arith.constant 0 : index
    %c25_87 = arith.constant 25 : index
    %92 = vector.load %arg12[%c0_86, %c25_87] : memref<4x456xbf16, #tpu.memory_space<vmem>>, vector<4x16xbf16>
    tpu.vector_store %arg12[%c0_86, %c25_87], %91 {strides = array<i32>} : memref<4x456xbf16, #tpu.memory_space<vmem>>, vector<4x16xbf16>,
    %c1_88 = arith.constant 1 : index
    %c0_89 = arith.constant 0 : index
    %c16_90 = arith.constant 16 : index
    %93 = vector.load %arg1[%c1_88, %c0_89, %c16_90] : memref<2x4x256xf32, #tpu.memory_space<vmem>>, vector<1x4x16xf32>
    %94 = vector.shape_cast %93 : vector<1x4x16xf32> to vector<4x16xf32>
    %95 = arith.truncf %94 : vector<4x16xf32> to vector<4x16xbf16>
    %c0_91 = arith.constant 0 : index
    %c49_92 = arith.constant 49 : index
    %96 = vector.load %arg12[%c0_91, %c49_92] : memref<4x456xbf16, #tpu.memory_space<vmem>>, vector<4x16xbf16>
    tpu.vector_store %arg12[%c0_91, %c49_92], %95 {strides = array<i32>} : memref<4x456xbf16, #tpu.memory_space<vmem>>, vector<4x16xbf16>,
    %c1_93 = arith.constant 1 : index
    %c0_94 = arith.constant 0 : index
    %c32_95 = arith.constant 32 : index
    %97 = vector.load %arg1[%c1_93, %c0_94, %c32_95] : memref<2x4x256xf32, #tpu.memory_space<vmem>>, vector<1x4x16xf32>
    %98 = vector.shape_cast %97 : vector<1x4x16xf32> to vector<4x16xf32>
    %99 = arith.truncf %98 : vector<4x16xf32> to vector<4x16xbf16>
    %c0_96 = arith.constant 0 : index
    %c73_97 = arith.constant 73 : index
    %100 = vector.load %arg12[%c0_96, %c73_97] : memref<4x456xbf16, #tpu.memory_space<vmem>>, vector<4x16xbf16>
    tpu.vector_store %arg12[%c0_96, %c73_97], %99 {strides = array<i32>} : memref<4x456xbf16, #tpu.memory_space<vmem>>, vector<4x16xbf16>,
    %c1_98 = arith.constant 1 : index
    %c0_99 = arith.constant 0 : index
    %c48_100 = arith.constant 48 : index
    %101 = vector.load %arg1[%c1_98, %c0_99, %c48_100] : memref<2x4x256xf32, #tpu.memory_space<vmem>>, vector<1x4x16xf32>
    %102 = vector.shape_cast %101 : vector<1x4x16xf32> to vector<4x16xf32>
    %103 = arith.truncf %102 : vector<4x16xf32> to vector<4x16xbf16>
    %c0_101 = arith.constant 0 : index
    %c97_102 = arith.constant 97 : index
    %104 = vector.load %arg12[%c0_101, %c97_102] : memref<4x456xbf16, #tpu.memory_space<vmem>>, vector<4x16xbf16>
    tpu.vector_store %arg12[%c0_101, %c97_102], %103 {strides = array<i32>} : memref<4x456xbf16, #tpu.memory_space<vmem>>, vector<4x16xbf16>,
    %c1_103 = arith.constant 1 : index
    %c0_104 = arith.constant 0 : index
    %c64_105 = arith.constant 64 : index
    %105 = vector.load %arg1[%c1_103, %c0_104, %c64_105] : memref<2x4x256xf32, #tpu.memory_space<vmem>>, vector<1x4x16xf32>
    %106 = vector.shape_cast %105 : vector<1x4x16xf32> to vector<4x16xf32>
    %107 = arith.truncf %106 : vector<4x16xf32> to vector<4x16xbf16>
    %c0_106 = arith.constant 0 : index
    %c121_107 = arith.constant 121 : index
    %108 = vector.load %arg12[%c0_106, %c121_107] : memref<4x456xbf16, #tpu.memory_space<vmem>>, vector<4x16xbf16>
    tpu.vector_store %arg12[%c0_106, %c121_107], %107 {strides = array<i32>} : memref<4x456xbf16, #tpu.memory_space<vmem>>, vector<4x16xbf16>,
    %c1_108 = arith.constant 1 : index
    %c0_109 = arith.constant 0 : index
    %c80_110 = arith.constant 80 : index
    %109 = vector.load %arg1[%c1_108, %c0_109, %c80_110] : memref<2x4x256xf32, #tpu.memory_space<vmem>>, vector<1x4x16xf32>
    %110 = vector.shape_cast %109 : vector<1x4x16xf32> to vector<4x16xf32>
    %111 = arith.truncf %110 : vector<4x16xf32> to vector<4x16xbf16>
    %c0_111 = arith.constant 0 : index
    %c145_112 = arith.constant 145 : index
    %112 = vector.load %arg12[%c0_111, %c145_112] : memref<4x456xbf16, #tpu.memory_space<vmem>>, vector<4x16xbf16>
    tpu.vector_store %arg12[%c0_111, %c145_112], %111 {strides = array<i32>} : memref<4x456xbf16, #tpu.memory_space<vmem>>, vector<4x16xbf16>,
    %c1_113 = arith.constant 1 : index
    %c0_114 = arith.constant 0 : index
    %c96_115 = arith.constant 96 : index
    %113 = vector.load %arg1[%c1_113, %c0_114, %c96_115] : memref<2x4x256xf32, #tpu.memory_space<vmem>>, vector<1x4x16xf32>
    %114 = vector.shape_cast %113 : vector<1x4x16xf32> to vector<4x16xf32>
    %115 = arith.truncf %114 : vector<4x16xf32> to vector<4x16xbf16>
    %c0_116 = arith.constant 0 : index
    %c169_117 = arith.constant 169 : index
    %116 = vector.load %arg12[%c0_116, %c169_117] : memref<4x456xbf16, #tpu.memory_space<vmem>>, vector<4x16xbf16>
    tpu.vector_store %arg12[%c0_116, %c169_117], %115 {strides = array<i32>} : memref<4x456xbf16, #tpu.memory_space<vmem>>, vector<4x16xbf16>,
    %c1_118 = arith.constant 1 : index
    %c0_119 = arith.constant 0 : index
    %c112_120 = arith.constant 112 : index
    %117 = vector.load %arg1[%c1_118, %c0_119, %c112_120] : memref<2x4x256xf32, #tpu.memory_space<vmem>>, vector<1x4x16xf32>
    %118 = vector.shape_cast %117 : vector<1x4x16xf32> to vector<4x16xf32>
    %119 = arith.truncf %118 : vector<4x16xf32> to vector<4x16xbf16>
    %c0_121 = arith.constant 0 : index
    %c193_122 = arith.constant 193 : index
    %120 = vector.load %arg12[%c0_121, %c193_122] : memref<4x456xbf16, #tpu.memory_space<vmem>>, vector<4x16xbf16>
    tpu.vector_store %arg12[%c0_121, %c193_122], %119 {strides = array<i32>} : memref<4x456xbf16, #tpu.memory_space<vmem>>, vector<4x16xbf16>,
    %c1_123 = arith.constant 1 : index
    %c0_124 = arith.constant 0 : index
    %c128_125 = arith.constant 128 : index
    %121 = vector.load %arg1[%c1_123, %c0_124, %c128_125] : memref<2x4x256xf32, #tpu.memory_space<vmem>>, vector<1x4x16xf32>
    %122 = vector.shape_cast %121 : vector<1x4x16xf32> to vector<4x16xf32>
    %123 = arith.truncf %122 : vector<4x16xf32> to vector<4x16xbf16>
    %c0_126 = arith.constant 0 : index
    %c217_127 = arith.constant 217 : index
    %124 = vector.load %arg12[%c0_126, %c217_127] : memref<4x456xbf16, #tpu.memory_space<vmem>>, vector<4x16xbf16>
    tpu.vector_store %arg12[%c0_126, %c217_127], %123 {strides = array<i32>} : memref<4x456xbf16, #tpu.memory_space<vmem>>, vector<4x16xbf16>,
    %c1_128 = arith.constant 1 : index
    %c0_129 = arith.constant 0 : index
    %c144_130 = arith.constant 144 : index
    %125 = vector.load %arg1[%c1_128, %c0_129, %c144_130] : memref<2x4x256xf32, #tpu.memory_space<vmem>>, vector<1x4x16xf32>
    %126 = vector.shape_cast %125 : vector<1x4x16xf32> to vector<4x16xf32>
    %127 = arith.truncf %126 : vector<4x16xf32> to vector<4x16xbf16>
    %c0_131 = arith.constant 0 : index
    %c241_132 = arith.constant 241 : index
    %128 = vector.load %arg12[%c0_131, %c241_132] : memref<4x456xbf16, #tpu.memory_space<vmem>>, vector<4x16xbf16>
    tpu.vector_store %arg12[%c0_131, %c241_132], %127 {strides = array<i32>} : memref<4x456xbf16, #tpu.memory_space<vmem>>, vector<4x16xbf16>,
    %c1_133 = arith.constant 1 : index
    %c0_134 = arith.constant 0 : index
    %c160_135 = arith.constant 160 : index
    %129 = vector.load %arg1[%c1_133, %c0_134, %c160_135] : memref<2x4x256xf32, #tpu.memory_space<vmem>>, vector<1x4x16xf32>
    %130 = vector.shape_cast %129 : vector<1x4x16xf32> to vector<4x16xf32>
    %131 = arith.truncf %130 : vector<4x16xf32> to vector<4x16xbf16>
    %c0_136 = arith.constant 0 : index
    %c265_137 = arith.constant 265 : index
    %132 = vector.load %arg12[%c0_136, %c265_137] : memref<4x456xbf16, #tpu.memory_space<vmem>>, vector<4x16xbf16>
    tpu.vector_store %arg12[%c0_136, %c265_137], %131 {strides = array<i32>} : memref<4x456xbf16, #tpu.memory_space<vmem>>, vector<4x16xbf16>,
    %c1_138 = arith.constant 1 : index
    %c0_139 = arith.constant 0 : index
    %c176_140 = arith.constant 176 : index
    %133 = vector.load %arg1[%c1_138, %c0_139, %c176_140] : memref<2x4x256xf32, #tpu.memory_space<vmem>>, vector<1x4x16xf32>
    %134 = vector.shape_cast %133 : vector<1x4x16xf32> to vector<4x16xf32>
    %135 = arith.truncf %134 : vector<4x16xf32> to vector<4x16xbf16>
    %c0_141 = arith.constant 0 : index
    %c289_142 = arith.constant 289 : index
    %136 = vector.load %arg12[%c0_141, %c289_142] : memref<4x456xbf16, #tpu.memory_space<vmem>>, vector<4x16xbf16>
    tpu.vector_store %arg12[%c0_141, %c289_142], %135 {strides = array<i32>} : memref<4x456xbf16, #tpu.memory_space<vmem>>, vector<4x16xbf16>,
    %c1_143 = arith.constant 1 : index
    %c0_144 = arith.constant 0 : index
    %c192_145 = arith.constant 192 : index
    %137 = vector.load %arg1[%c1_143, %c0_144, %c192_145] : memref<2x4x256xf32, #tpu.memory_space<vmem>>, vector<1x4x16xf32>
    %138 = vector.shape_cast %137 : vector<1x4x16xf32> to vector<4x16xf32>
    %139 = arith.truncf %138 : vector<4x16xf32> to vector<4x16xbf16>
    %c0_146 = arith.constant 0 : index
    %c313_147 = arith.constant 313 : index
    %140 = vector.load %arg12[%c0_146, %c313_147] : memref<4x456xbf16, #tpu.memory_space<vmem>>, vector<4x16xbf16>
    tpu.vector_store %arg12[%c0_146, %c313_147], %139 {strides = array<i32>} : memref<4x456xbf16, #tpu.memory_space<vmem>>, vector<4x16xbf16>,
    %c1_148 = arith.constant 1 : index
    %c0_149 = arith.constant 0 : index
    %c208_150 = arith.constant 208 : index
    %141 = vector.load %arg1[%c1_148, %c0_149, %c208_150] : memref<2x4x256xf32, #tpu.memory_space<vmem>>, vector<1x4x16xf32>
    %142 = vector.shape_cast %141 : vector<1x4x16xf32> to vector<4x16xf32>
    %143 = arith.truncf %142 : vector<4x16xf32> to vector<4x16xbf16>
    %c0_151 = arith.constant 0 : index
    %c337_152 = arith.constant 337 : index
    %144 = vector.load %arg12[%c0_151, %c337_152] : memref<4x456xbf16, #tpu.memory_space<vmem>>, vector<4x16xbf16>
    tpu.vector_store %arg12[%c0_151, %c337_152], %143 {strides = array<i32>} : memref<4x456xbf16, #tpu.memory_space<vmem>>, vector<4x16xbf16>,
    %c1_153 = arith.constant 1 : index
    %c0_154 = arith.constant 0 : index
    %c224_155 = arith.constant 224 : index
    %145 = vector.load %arg1[%c1_153, %c0_154, %c224_155] : memref<2x4x256xf32, #tpu.memory_space<vmem>>, vector<1x4x16xf32>
    %146 = vector.shape_cast %145 : vector<1x4x16xf32> to vector<4x16xf32>
    %147 = arith.truncf %146 : vector<4x16xf32> to vector<4x16xbf16>
    %c0_156 = arith.constant 0 : index
    %c361_157 = arith.constant 361 : index
    %148 = vector.load %arg12[%c0_156, %c361_157] : memref<4x456xbf16, #tpu.memory_space<vmem>>, vector<4x16xbf16>
    tpu.vector_store %arg12[%c0_156, %c361_157], %147 {strides = array<i32>} : memref<4x456xbf16, #tpu.memory_space<vmem>>, vector<4x16xbf16>,
    %c1_158 = arith.constant 1 : index
    %c0_159 = arith.constant 0 : index
    %c240_160 = arith.constant 240 : index
    %149 = vector.load %arg1[%c1_158, %c0_159, %c240_160] : memref<2x4x256xf32, #tpu.memory_space<vmem>>, vector<1x4x16xf32>
    %150 = vector.shape_cast %149 : vector<1x4x16xf32> to vector<4x16xf32>
    %151 = arith.truncf %150 : vector<4x16xf32> to vector<4x16xbf16>
    %c0_161 = arith.constant 0 : index
    %c385_162 = arith.constant 385 : index
    %152 = vector.load %arg12[%c0_161, %c385_162] : memref<4x456xbf16, #tpu.memory_space<vmem>>, vector<4x16xbf16>
    tpu.vector_store %arg12[%c0_161, %c385_162], %151 {strides = array<i32>} : memref<4x456xbf16, #tpu.memory_space<vmem>>, vector<4x16xbf16>,
    %c0_163 = arith.constant 0 : index
    %c0_164 = arith.constant 0 : index
    %153 = vector.load %arg12[%c0_163, %c0_164] : memref<4x456xbf16, #tpu.memory_space<vmem>>, vector<4x384xbf16>
    %c0_165 = arith.constant 0 : index
    %c384 = arith.constant 384 : index
    %154 = vector.load %arg14[%c0_165, %c384] : memref<36x768xbf16, #tpu.memory_space<vmem>>, vector<4x384xbf16>
    tpu.vector_store %arg14[%c0_165, %c384], %153 {strides = array<i32>} : memref<36x768xbf16, #tpu.memory_space<vmem>>, vector<4x384xbf16>,
    %c0_166 = arith.constant 0 : index
    %c1_167 = arith.constant 1 : index
    %155 = vector.load %arg12[%c0_166, %c1_167] : memref<4x456xbf16, #tpu.memory_space<vmem>>, vector<4x384xbf16>
    %c4_168 = arith.constant 4 : index
    %c384_169 = arith.constant 384 : index
    %156 = vector.load %arg14[%c4_168, %c384_169] : memref<36x768xbf16, #tpu.memory_space<vmem>>, vector<4x384xbf16>
    tpu.vector_store %arg14[%c4_168, %c384_169], %155 {strides = array<i32>} : memref<36x768xbf16, #tpu.memory_space<vmem>>, vector<4x384xbf16>,
    %c0_170 = arith.constant 0 : index
    %c2_171 = arith.constant 2 : index
    %157 = vector.load %arg12[%c0_170, %c2_171] : memref<4x456xbf16, #tpu.memory_space<vmem>>, vector<4x384xbf16>
    %c8_172 = arith.constant 8 : index
    %c384_173 = arith.constant 384 : index
    %158 = vector.load %arg14[%c8_172, %c384_173] : memref<36x768xbf16, #tpu.memory_space<vmem>>, vector<4x384xbf16>
    tpu.vector_store %arg14[%c8_172, %c384_173], %157 {strides = array<i32>} : memref<36x768xbf16, #tpu.memory_space<vmem>>, vector<4x384xbf16>,
    %c0_174 = arith.constant 0 : index
    %c24_175 = arith.constant 24 : index
    %159 = vector.load %arg12[%c0_174, %c24_175] : memref<4x456xbf16, #tpu.memory_space<vmem>>, vector<4x384xbf16>
    %c12_176 = arith.constant 12 : index
    %c384_177 = arith.constant 384 : index
    %160 = vector.load %arg14[%c12_176, %c384_177] : memref<36x768xbf16, #tpu.memory_space<vmem>>, vector<4x384xbf16>
    tpu.vector_store %arg14[%c12_176, %c384_177], %159 {strides = array<i32>} : memref<36x768xbf16, #tpu.memory_space<vmem>>, vector<4x384xbf16>,
    %c0_178 = arith.constant 0 : index
    %c25_179 = arith.constant 25 : index
    %161 = vector.load %arg12[%c0_178, %c25_179] : memref<4x456xbf16, #tpu.memory_space<vmem>>, vector<4x384xbf16>
    %c16_180 = arith.constant 16 : index
    %c384_181 = arith.constant 384 : index
    %162 = vector.load %arg14[%c16_180, %c384_181] : memref<36x768xbf16, #tpu.memory_space<vmem>>, vector<4x384xbf16>
    tpu.vector_store %arg14[%c16_180, %c384_181], %161 {strides = array<i32>} : memref<36x768xbf16, #tpu.memory_space<vmem>>, vector<4x384xbf16>,
    %c0_182 = arith.constant 0 : index
    %c26_183 = arith.constant 26 : index
    %163 = vector.load %arg12[%c0_182, %c26_183] : memref<4x456xbf16, #tpu.memory_space<vmem>>, vector<4x384xbf16>
    %c20_184 = arith.constant 20 : index
    %c384_185 = arith.constant 384 : index
    %164 = vector.load %arg14[%c20_184, %c384_185] : memref<36x768xbf16, #tpu.memory_space<vmem>>, vector<4x384xbf16>
    tpu.vector_store %arg14[%c20_184, %c384_185], %163 {strides = array<i32>} : memref<36x768xbf16, #tpu.memory_space<vmem>>, vector<4x384xbf16>,
    %c0_186 = arith.constant 0 : index
    %c48_187 = arith.constant 48 : index
    %165 = vector.load %arg12[%c0_186, %c48_187] : memref<4x456xbf16, #tpu.memory_space<vmem>>, vector<4x384xbf16>
    %c24_188 = arith.constant 24 : index
    %c384_189 = arith.constant 384 : index
    %166 = vector.load %arg14[%c24_188, %c384_189] : memref<36x768xbf16, #tpu.memory_space<vmem>>, vector<4x384xbf16>
    tpu.vector_store %arg14[%c24_188, %c384_189], %165 {strides = array<i32>} : memref<36x768xbf16, #tpu.memory_space<vmem>>, vector<4x384xbf16>,
    %c0_190 = arith.constant 0 : index
    %c49_191 = arith.constant 49 : index
    %167 = vector.load %arg12[%c0_190, %c49_191] : memref<4x456xbf16, #tpu.memory_space<vmem>>, vector<4x384xbf16>
    %c28_192 = arith.constant 28 : index
    %c384_193 = arith.constant 384 : index
    %168 = vector.load %arg14[%c28_192, %c384_193] : memref<36x768xbf16, #tpu.memory_space<vmem>>, vector<4x384xbf16>
    tpu.vector_store %arg14[%c28_192, %c384_193], %167 {strides = array<i32>} : memref<36x768xbf16, #tpu.memory_space<vmem>>, vector<4x384xbf16>,
    %c0_194 = arith.constant 0 : index
    %c50_195 = arith.constant 50 : index
    %169 = vector.load %arg12[%c0_194, %c50_195] : memref<4x456xbf16, #tpu.memory_space<vmem>>, vector<4x384xbf16>
    %c32_196 = arith.constant 32 : index
    %c384_197 = arith.constant 384 : index
    %170 = vector.load %arg14[%c32_196, %c384_197] : memref<36x768xbf16, #tpu.memory_space<vmem>>, vector<4x384xbf16>
    tpu.vector_store %arg14[%c32_196, %c384_197], %169 {strides = array<i32>} : memref<36x768xbf16, #tpu.memory_space<vmem>>, vector<4x384xbf16>,
    %c0_198 = arith.constant 0 : index
    %c0_199 = arith.constant 0 : index
    %171 = vector.load %arg3[%c0_198, %c0_199] : memref<8x36xbf16, #tpu.memory_space<vmem>>, vector<8x36xbf16>
    %c0_200 = arith.constant 0 : index
    %c0_201 = arith.constant 0 : index
    %172 = vector.load %arg14[%c0_200, %c0_201] : memref<36x768xbf16, #tpu.memory_space<vmem>>, vector<36x768xbf16>
    %cst_202 = arith.constant dense<0.000000e+00> : vector<8x768xf32>
    %173 = tpu.matmul %171, %172, %cst_202 {dimension_numbers = #tpu.dot_dimension_numbers<[1], [0], [0], [1], [0, 0, 1, 1], [], []>} : vector<8x36xbf16>, vector<36x768xbf16>, vector<8x768xf32> -> vector<8x768xf32>
    %c0_203 = arith.constant 0 : index
    %c0_204 = arith.constant 0 : index
    %174 = vector.load %arg4[%c0_203, %c0_204] : memref<8x1xf32, #tpu.memory_space<vmem>>, vector<8x1xf32>
    %175 = vector.broadcast %174 : vector<8x1xf32> to vector<8x768xf32>
    %176 = arith.addf %173, %175 : vector<8x768xf32>
    %c0_205 = arith.constant 0 : index
    %c0_206 = arith.constant 0 : index
    %177 = vector.load %arg5[%c0_205, %c0_206] : memref<4x1xf32, #tpu.memory_space<vmem>>, vector<4x1xf32>
    %c0_207 = arith.constant 0 : index
    %c0_208 = arith.constant 0 : index
    %178 = vector.load %arg6[%c0_207, %c0_208] : memref<4x1xf32, #tpu.memory_space<vmem>>, vector<4x1xf32>
    %179 = vector.extract_strided_slice %176 {offsets = [0, 0], sizes = [8, 384], strides = [1, 1]} : vector<8x768xf32> to vector<8x384xf32>
    %180 = vector.extract_strided_slice %179 {offsets = [0, 0], sizes = [4, 384], strides = [1, 1]} : vector<8x384xf32> to vector<4x384xf32>
    %181 = vector.broadcast %0 : vector<1x384xf32> to vector<4x384xf32>
    %182 = arith.mulf %180, %181 : vector<4x384xf32>
    %cst_209 = arith.constant dense<0.000000e+00> : vector<4xf32>
    %183 = vector.multi_reduction <add>, %182, %cst_209 [1] : vector<4x384xf32> to vector<4xf32>
    %184 = vector.shape_cast %183 : vector<4xf32> to vector<4x1xf32>
    %cst_210 = arith.constant 3.906250e-03 : f32
    %185 = vector.broadcast %cst_210 : f32 to vector<4x1xf32>
    %186 = arith.mulf %184, %185 : vector<4x1xf32>
    %187 = vector.broadcast %186 : vector<4x1xf32> to vector<4x384xf32>
    %188 = arith.subf %180, %187 : vector<4x384xf32>
    %189 = vector.broadcast %0 : vector<1x384xf32> to vector<4x384xf32>
    %190 = arith.mulf %188, %189 : vector<4x384xf32>
    %191 = arith.mulf %190, %190 : vector<4x384xf32>
    %cst_211 = arith.constant dense<0.000000e+00> : vector<4xf32>
    %192 = vector.multi_reduction <add>, %191, %cst_211 [1] : vector<4x384xf32> to vector<4xf32>
    %193 = vector.shape_cast %192 : vector<4xf32> to vector<4x1xf32>
    %cst_212 = arith.constant 3.906250e-03 : f32
    %194 = vector.broadcast %cst_212 : f32 to vector<4x1xf32>
    %195 = arith.mulf %193, %194 : vector<4x1xf32>
    %cst_213 = arith.constant 9.99999974E-6 : f32
    %196 = vector.broadcast %cst_213 : f32 to vector<4x1xf32>
    %197 = arith.addf %195, %196 : vector<4x1xf32>
    %198 = math.rsqrt %197 : vector<4x1xf32>
    %199 = arith.mulf %198, %177 : vector<4x1xf32>
    %200 = vector.broadcast %199 : vector<4x1xf32> to vector<4x384xf32>
    %201 = arith.mulf %190, %200 : vector<4x384xf32>
    %202 = vector.broadcast %178 : vector<4x1xf32> to vector<4x384xf32>
    %203 = arith.addf %201, %202 : vector<4x384xf32>
    %cst_214 = arith.constant 0.000000e+00 : f32
    %204 = vector.broadcast %cst_214 : f32 to vector<4x384xf32>
    %205 = arith.cmpf oge, %203, %204 : vector<4x384xf32>
    %cst_215 = arith.constant 1.000000e-01 : f32
    %206 = vector.broadcast %cst_215 : f32 to vector<4x384xf32>
    %207 = arith.mulf %206, %203 : vector<4x384xf32>
    %208 = arith.select %205, %203, %207 : vector<4x384xi1>, vector<4x384xf32>
    %209 = vector.broadcast %0 : vector<1x384xf32> to vector<4x384xf32>
    %210 = arith.mulf %208, %209 : vector<4x384xf32>
    %211 = arith.truncf %210 : vector<4x384xf32> to vector<4x384xbf16>
    %c0_216 = arith.constant 0 : index
    %c25_217 = arith.constant 25 : index
    %212 = vector.load %arg13[%c0_216, %c25_217] : memref<8x456xbf16, #tpu.memory_space<vmem>>, vector<4x384xbf16>
    tpu.vector_store %arg13[%c0_216, %c25_217], %211 {strides = array<i32>} : memref<8x456xbf16, #tpu.memory_space<vmem>>, vector<4x384xbf16>,
    %213 = vector.extract_strided_slice %179 {offsets = [4, 0], sizes = [4, 384], strides = [1, 1]} : vector<8x384xf32> to vector<4x384xf32>
    %cst_218 = arith.constant 0.000000e+00 : f32
    %214 = vector.broadcast %cst_218 : f32 to vector<4x384xf32>
    %215 = arith.cmpf oge, %213, %214 : vector<4x384xf32>
    %cst_219 = arith.constant 1.000000e-01 : f32
    %216 = vector.broadcast %cst_219 : f32 to vector<4x384xf32>
    %217 = arith.mulf %216, %213 : vector<4x384xf32>
    %218 = arith.select %215, %213, %217 : vector<4x384xi1>, vector<4x384xf32>
    %219 = vector.broadcast %0 : vector<1x384xf32> to vector<4x384xf32>
    %220 = arith.mulf %218, %219 : vector<4x384xf32>
    %221 = arith.truncf %220 : vector<4x384xf32> to vector<4x384xbf16>
    %c4_220 = arith.constant 4 : index
    %c25_221 = arith.constant 25 : index
    %222 = vector.load %arg13[%c4_220, %c25_221] : memref<8x456xbf16, #tpu.memory_space<vmem>>, vector<4x384xbf16>
    tpu.vector_store %arg13[%c4_220, %c25_221], %221 {strides = array<i32>} : memref<8x456xbf16, #tpu.memory_space<vmem>>, vector<4x384xbf16>,
    %c0_222 = arith.constant 0 : index
    %c0_223 = arith.constant 0 : index
    %223 = vector.load %arg13[%c0_222, %c0_223] : memref<8x456xbf16, #tpu.memory_space<vmem>>, vector<8x384xbf16>
    %c0_224 = arith.constant 0 : index
    %c0_225 = arith.constant 0 : index
    %224 = vector.load %arg15[%c0_224, %c0_225] : memref<72x768xbf16, #tpu.memory_space<vmem>>, vector<8x384xbf16>
    tpu.vector_store %arg15[%c0_224, %c0_225], %223 {strides = array<i32>} : memref<72x768xbf16, #tpu.memory_space<vmem>>, vector<8x384xbf16>,
    %c0_226 = arith.constant 0 : index
    %c1_227 = arith.constant 1 : index
    %225 = vector.load %arg13[%c0_226, %c1_227] : memref<8x456xbf16, #tpu.memory_space<vmem>>, vector<8x384xbf16>
    %c8_228 = arith.constant 8 : index
    %c0_229 = arith.constant 0 : index
    %226 = vector.load %arg15[%c8_228, %c0_229] : memref<72x768xbf16, #tpu.memory_space<vmem>>, vector<8x384xbf16>
    tpu.vector_store %arg15[%c8_228, %c0_229], %225 {strides = array<i32>} : memref<72x768xbf16, #tpu.memory_space<vmem>>, vector<8x384xbf16>,
    %c0_230 = arith.constant 0 : index
    %c2_231 = arith.constant 2 : index
    %227 = vector.load %arg13[%c0_230, %c2_231] : memref<8x456xbf16, #tpu.memory_space<vmem>>, vector<8x384xbf16>
    %c16_232 = arith.constant 16 : index
    %c0_233 = arith.constant 0 : index
    %228 = vector.load %arg15[%c16_232, %c0_233] : memref<72x768xbf16, #tpu.memory_space<vmem>>, vector<8x384xbf16>
    tpu.vector_store %arg15[%c16_232, %c0_233], %227 {strides = array<i32>} : memref<72x768xbf16, #tpu.memory_space<vmem>>, vector<8x384xbf16>,
    %c0_234 = arith.constant 0 : index
    %c24_235 = arith.constant 24 : index
    %229 = vector.load %arg13[%c0_234, %c24_235] : memref<8x456xbf16, #tpu.memory_space<vmem>>, vector<8x384xbf16>
    %c24_236 = arith.constant 24 : index
    %c0_237 = arith.constant 0 : index
    %230 = vector.load %arg15[%c24_236, %c0_237] : memref<72x768xbf16, #tpu.memory_space<vmem>>, vector<8x384xbf16>
    tpu.vector_store %arg15[%c24_236, %c0_237], %229 {strides = array<i32>} : memref<72x768xbf16, #tpu.memory_space<vmem>>, vector<8x384xbf16>,
    %c0_238 = arith.constant 0 : index
    %c25_239 = arith.constant 25 : index
    %231 = vector.load %arg13[%c0_238, %c25_239] : memref<8x456xbf16, #tpu.memory_space<vmem>>, vector<8x384xbf16>
    %c32_240 = arith.constant 32 : index
    %c0_241 = arith.constant 0 : index
    %232 = vector.load %arg15[%c32_240, %c0_241] : memref<72x768xbf16, #tpu.memory_space<vmem>>, vector<8x384xbf16>
    tpu.vector_store %arg15[%c32_240, %c0_241], %231 {strides = array<i32>} : memref<72x768xbf16, #tpu.memory_space<vmem>>, vector<8x384xbf16>,
    %c0_242 = arith.constant 0 : index
    %c26_243 = arith.constant 26 : index
    %233 = vector.load %arg13[%c0_242, %c26_243] : memref<8x456xbf16, #tpu.memory_space<vmem>>, vector<8x384xbf16>
    %c40 = arith.constant 40 : index
    %c0_244 = arith.constant 0 : index
    %234 = vector.load %arg15[%c40, %c0_244] : memref<72x768xbf16, #tpu.memory_space<vmem>>, vector<8x384xbf16>
    tpu.vector_store %arg15[%c40, %c0_244], %233 {strides = array<i32>} : memref<72x768xbf16, #tpu.memory_space<vmem>>, vector<8x384xbf16>,
    %c0_245 = arith.constant 0 : index
    %c48_246 = arith.constant 48 : index
    %235 = vector.load %arg13[%c0_245, %c48_246] : memref<8x456xbf16, #tpu.memory_space<vmem>>, vector<8x384xbf16>
    %c48_247 = arith.constant 48 : index
    %c0_248 = arith.constant 0 : index
    %236 = vector.load %arg15[%c48_247, %c0_248] : memref<72x768xbf16, #tpu.memory_space<vmem>>, vector<8x384xbf16>
    tpu.vector_store %arg15[%c48_247, %c0_248], %235 {strides = array<i32>} : memref<72x768xbf16, #tpu.memory_space<vmem>>, vector<8x384xbf16>,
    %c0_249 = arith.constant 0 : index
    %c49_250 = arith.constant 49 : index
    %237 = vector.load %arg13[%c0_249, %c49_250] : memref<8x456xbf16, #tpu.memory_space<vmem>>, vector<8x384xbf16>
    %c56 = arith.constant 56 : index
    %c0_251 = arith.constant 0 : index
    %238 = vector.load %arg15[%c56, %c0_251] : memref<72x768xbf16, #tpu.memory_space<vmem>>, vector<8x384xbf16>
    tpu.vector_store %arg15[%c56, %c0_251], %237 {strides = array<i32>} : memref<72x768xbf16, #tpu.memory_space<vmem>>, vector<8x384xbf16>,
    %c0_252 = arith.constant 0 : index
    %c50_253 = arith.constant 50 : index
    %239 = vector.load %arg13[%c0_252, %c50_253] : memref<8x456xbf16, #tpu.memory_space<vmem>>, vector<8x384xbf16>
    %c64_254 = arith.constant 64 : index
    %c0_255 = arith.constant 0 : index
    %240 = vector.load %arg15[%c64_254, %c0_255] : memref<72x768xbf16, #tpu.memory_space<vmem>>, vector<8x384xbf16>
    tpu.vector_store %arg15[%c64_254, %c0_255], %239 {strides = array<i32>} : memref<72x768xbf16, #tpu.memory_space<vmem>>, vector<8x384xbf16>,
    %241 = vector.extract_strided_slice %176 {offsets = [0, 384], sizes = [8, 384], strides = [1, 1]} : vector<8x768xf32> to vector<8x384xf32>
    %242 = vector.extract_strided_slice %241 {offsets = [0, 0], sizes = [4, 384], strides = [1, 1]} : vector<8x384xf32> to vector<4x384xf32>
    %243 = vector.broadcast %0 : vector<1x384xf32> to vector<4x384xf32>
    %244 = arith.mulf %242, %243 : vector<4x384xf32>
    %cst_256 = arith.constant dense<0.000000e+00> : vector<4xf32>
    %245 = vector.multi_reduction <add>, %244, %cst_256 [1] : vector<4x384xf32> to vector<4xf32>
    %246 = vector.shape_cast %245 : vector<4xf32> to vector<4x1xf32>
    %cst_257 = arith.constant 3.906250e-03 : f32
    %247 = vector.broadcast %cst_257 : f32 to vector<4x1xf32>
    %248 = arith.mulf %246, %247 : vector<4x1xf32>
    %249 = vector.broadcast %248 : vector<4x1xf32> to vector<4x384xf32>
    %250 = arith.subf %242, %249 : vector<4x384xf32>
    %251 = vector.broadcast %0 : vector<1x384xf32> to vector<4x384xf32>
    %252 = arith.mulf %250, %251 : vector<4x384xf32>
    %253 = arith.mulf %252, %252 : vector<4x384xf32>
    %cst_258 = arith.constant dense<0.000000e+00> : vector<4xf32>
    %254 = vector.multi_reduction <add>, %253, %cst_258 [1] : vector<4x384xf32> to vector<4xf32>
    %255 = vector.shape_cast %254 : vector<4xf32> to vector<4x1xf32>
    %cst_259 = arith.constant 3.906250e-03 : f32
    %256 = vector.broadcast %cst_259 : f32 to vector<4x1xf32>
    %257 = arith.mulf %255, %256 : vector<4x1xf32>
    %cst_260 = arith.constant 9.99999974E-6 : f32
    %258 = vector.broadcast %cst_260 : f32 to vector<4x1xf32>
    %259 = arith.addf %257, %258 : vector<4x1xf32>
    %260 = math.rsqrt %259 : vector<4x1xf32>
    %261 = arith.mulf %260, %177 : vector<4x1xf32>
    %262 = vector.broadcast %261 : vector<4x1xf32> to vector<4x384xf32>
    %263 = arith.mulf %252, %262 : vector<4x384xf32>
    %264 = vector.broadcast %178 : vector<4x1xf32> to vector<4x384xf32>
    %265 = arith.addf %263, %264 : vector<4x384xf32>
    %cst_261 = arith.constant 0.000000e+00 : f32
    %266 = vector.broadcast %cst_261 : f32 to vector<4x384xf32>
    %267 = arith.cmpf oge, %265, %266 : vector<4x384xf32>
    %cst_262 = arith.constant 1.000000e-01 : f32
    %268 = vector.broadcast %cst_262 : f32 to vector<4x384xf32>
    %269 = arith.mulf %268, %265 : vector<4x384xf32>
    %270 = arith.select %267, %265, %269 : vector<4x384xi1>, vector<4x384xf32>
    %271 = vector.broadcast %0 : vector<1x384xf32> to vector<4x384xf32>
    %272 = arith.mulf %270, %271 : vector<4x384xf32>
    %273 = arith.truncf %272 : vector<4x384xf32> to vector<4x384xbf16>
    %c0_263 = arith.constant 0 : index
    %c25_264 = arith.constant 25 : index
    %274 = vector.load %arg13[%c0_263, %c25_264] : memref<8x456xbf16, #tpu.memory_space<vmem>>, vector<4x384xbf16>
    tpu.vector_store %arg13[%c0_263, %c25_264], %273 {strides = array<i32>} : memref<8x456xbf16, #tpu.memory_space<vmem>>, vector<4x384xbf16>,
    %275 = vector.extract_strided_slice %241 {offsets = [4, 0], sizes = [4, 384], strides = [1, 1]} : vector<8x384xf32> to vector<4x384xf32>
    %cst_265 = arith.constant 0.000000e+00 : f32
    %276 = vector.broadcast %cst_265 : f32 to vector<4x384xf32>
    %277 = arith.cmpf oge, %275, %276 : vector<4x384xf32>
    %cst_266 = arith.constant 1.000000e-01 : f32
    %278 = vector.broadcast %cst_266 : f32 to vector<4x384xf32>
    %279 = arith.mulf %278, %275 : vector<4x384xf32>
    %280 = arith.select %277, %275, %279 : vector<4x384xi1>, vector<4x384xf32>
    %281 = vector.broadcast %0 : vector<1x384xf32> to vector<4x384xf32>
    %282 = arith.mulf %280, %281 : vector<4x384xf32>
    %283 = arith.truncf %282 : vector<4x384xf32> to vector<4x384xbf16>
    %c4_267 = arith.constant 4 : index
    %c25_268 = arith.constant 25 : index
    %284 = vector.load %arg13[%c4_267, %c25_268] : memref<8x456xbf16, #tpu.memory_space<vmem>>, vector<4x384xbf16>
    tpu.vector_store %arg13[%c4_267, %c25_268], %283 {strides = array<i32>} : memref<8x456xbf16, #tpu.memory_space<vmem>>, vector<4x384xbf16>,
    %c0_269 = arith.constant 0 : index
    %c0_270 = arith.constant 0 : index
    %285 = vector.load %arg13[%c0_269, %c0_270] : memref<8x456xbf16, #tpu.memory_space<vmem>>, vector<8x384xbf16>
    %c0_271 = arith.constant 0 : index
    %c384_272 = arith.constant 384 : index
    %286 = vector.load %arg15[%c0_271, %c384_272] : memref<72x768xbf16, #tpu.memory_space<vmem>>, vector<8x384xbf16>
    tpu.vector_store %arg15[%c0_271, %c384_272], %285 {strides = array<i32>} : memref<72x768xbf16, #tpu.memory_space<vmem>>, vector<8x384xbf16>,
    %c0_273 = arith.constant 0 : index
    %c1_274 = arith.constant 1 : index
    %287 = vector.load %arg13[%c0_273, %c1_274] : memref<8x456xbf16, #tpu.memory_space<vmem>>, vector<8x384xbf16>
    %c8_275 = arith.constant 8 : index
    %c384_276 = arith.constant 384 : index
    %288 = vector.load %arg15[%c8_275, %c384_276] : memref<72x768xbf16, #tpu.memory_space<vmem>>, vector<8x384xbf16>
    tpu.vector_store %arg15[%c8_275, %c384_276], %287 {strides = array<i32>} : memref<72x768xbf16, #tpu.memory_space<vmem>>, vector<8x384xbf16>,
    %c0_277 = arith.constant 0 : index
    %c2_278 = arith.constant 2 : index
    %289 = vector.load %arg13[%c0_277, %c2_278] : memref<8x456xbf16, #tpu.memory_space<vmem>>, vector<8x384xbf16>
    %c16_279 = arith.constant 16 : index
    %c384_280 = arith.constant 384 : index
    %290 = vector.load %arg15[%c16_279, %c384_280] : memref<72x768xbf16, #tpu.memory_space<vmem>>, vector<8x384xbf16>
    tpu.vector_store %arg15[%c16_279, %c384_280], %289 {strides = array<i32>} : memref<72x768xbf16, #tpu.memory_space<vmem>>, vector<8x384xbf16>,
    %c0_281 = arith.constant 0 : index
    %c24_282 = arith.constant 24 : index
    %291 = vector.load %arg13[%c0_281, %c24_282] : memref<8x456xbf16, #tpu.memory_space<vmem>>, vector<8x384xbf16>
    %c24_283 = arith.constant 24 : index
    %c384_284 = arith.constant 384 : index
    %292 = vector.load %arg15[%c24_283, %c384_284] : memref<72x768xbf16, #tpu.memory_space<vmem>>, vector<8x384xbf16>
    tpu.vector_store %arg15[%c24_283, %c384_284], %291 {strides = array<i32>} : memref<72x768xbf16, #tpu.memory_space<vmem>>, vector<8x384xbf16>,
    %c0_285 = arith.constant 0 : index
    %c25_286 = arith.constant 25 : index
    %293 = vector.load %arg13[%c0_285, %c25_286] : memref<8x456xbf16, #tpu.memory_space<vmem>>, vector<8x384xbf16>
    %c32_287 = arith.constant 32 : index
    %c384_288 = arith.constant 384 : index
    %294 = vector.load %arg15[%c32_287, %c384_288] : memref<72x768xbf16, #tpu.memory_space<vmem>>, vector<8x384xbf16>
    tpu.vector_store %arg15[%c32_287, %c384_288], %293 {strides = array<i32>} : memref<72x768xbf16, #tpu.memory_space<vmem>>, vector<8x384xbf16>,
    %c0_289 = arith.constant 0 : index
    %c26_290 = arith.constant 26 : index
    %295 = vector.load %arg13[%c0_289, %c26_290] : memref<8x456xbf16, #tpu.memory_space<vmem>>, vector<8x384xbf16>
    %c40_291 = arith.constant 40 : index
    %c384_292 = arith.constant 384 : index
    %296 = vector.load %arg15[%c40_291, %c384_292] : memref<72x768xbf16, #tpu.memory_space<vmem>>, vector<8x384xbf16>
    tpu.vector_store %arg15[%c40_291, %c384_292], %295 {strides = array<i32>} : memref<72x768xbf16, #tpu.memory_space<vmem>>, vector<8x384xbf16>,
    %c0_293 = arith.constant 0 : index
    %c48_294 = arith.constant 48 : index
    %297 = vector.load %arg13[%c0_293, %c48_294] : memref<8x456xbf16, #tpu.memory_space<vmem>>, vector<8x384xbf16>
    %c48_295 = arith.constant 48 : index
    %c384_296 = arith.constant 384 : index
    %298 = vector.load %arg15[%c48_295, %c384_296] : memref<72x768xbf16, #tpu.memory_space<vmem>>, vector<8x384xbf16>
    tpu.vector_store %arg15[%c48_295, %c384_296], %297 {strides = array<i32>} : memref<72x768xbf16, #tpu.memory_space<vmem>>, vector<8x384xbf16>,
    %c0_297 = arith.constant 0 : index
    %c49_298 = arith.constant 49 : index
    %299 = vector.load %arg13[%c0_297, %c49_298] : memref<8x456xbf16, #tpu.memory_space<vmem>>, vector<8x384xbf16>
    %c56_299 = arith.constant 56 : index
    %c384_300 = arith.constant 384 : index
    %300 = vector.load %arg15[%c56_299, %c384_300] : memref<72x768xbf16, #tpu.memory_space<vmem>>, vector<8x384xbf16>
    tpu.vector_store %arg15[%c56_299, %c384_300], %299 {strides = array<i32>} : memref<72x768xbf16, #tpu.memory_space<vmem>>, vector<8x384xbf16>,
    %c0_301 = arith.constant 0 : index
    %c50_302 = arith.constant 50 : index
    %301 = vector.load %arg13[%c0_301, %c50_302] : memref<8x456xbf16, #tpu.memory_space<vmem>>, vector<8x384xbf16>
    %c64_303 = arith.constant 64 : index
    %c384_304 = arith.constant 384 : index
    %302 = vector.load %arg15[%c64_303, %c384_304] : memref<72x768xbf16, #tpu.memory_space<vmem>>, vector<8x384xbf16>
    tpu.vector_store %arg15[%c64_303, %c384_304], %301 {strides = array<i32>} : memref<72x768xbf16, #tpu.memory_space<vmem>>, vector<8x384xbf16>,
    %c0_305 = arith.constant 0 : index
    %c0_306 = arith.constant 0 : index
    %303 = vector.load %arg7[%c0_305, %c0_306] : memref<8x72xbf16, #tpu.memory_space<vmem>>, vector<8x72xbf16>
    %c0_307 = arith.constant 0 : index
    %c0_308 = arith.constant 0 : index
    %304 = vector.load %arg15[%c0_307, %c0_308] : memref<72x768xbf16, #tpu.memory_space<vmem>>, vector<72x768xbf16>
    %cst_309 = arith.constant dense<0.000000e+00> : vector<8x768xf32>
    %305 = tpu.matmul %303, %304, %cst_309 {dimension_numbers = #tpu.dot_dimension_numbers<[1], [0], [0], [1], [0, 0, 1, 1], [], []>} : vector<8x72xbf16>, vector<72x768xbf16>, vector<8x768xf32> -> vector<8x768xf32>
    %c0_310 = arith.constant 0 : index
    %c0_311 = arith.constant 0 : index
    %306 = vector.load %arg8[%c0_310, %c0_311] : memref<8x1xf32, #tpu.memory_space<vmem>>, vector<8x1xf32>
    %307 = vector.broadcast %306 : vector<8x1xf32> to vector<8x768xf32>
    %308 = arith.addf %305, %307 : vector<8x768xf32>
    %cst_312 = arith.constant 0.000000e+00 : f32
    %309 = vector.broadcast %cst_312 : f32 to vector<8x768xf32>
    %310 = arith.cmpf oge, %308, %309 : vector<8x768xf32>
    %cst_313 = arith.constant 1.000000e-01 : f32
    %311 = vector.broadcast %cst_313 : f32 to vector<8x768xf32>
    %312 = arith.mulf %311, %308 : vector<8x768xf32>
    %313 = arith.select %310, %308, %312 : vector<8x768xi1>, vector<8x768xf32>
    %c0_314 = arith.constant 0 : index
    %c0_315 = arith.constant 0 : index
    %314 = vector.load %arg9[%c0_314, %c0_315] : memref<8x4xbf16, #tpu.memory_space<vmem>>, vector<8x4xbf16>
    %c16_316 = arith.constant 16 : index
    %c0_317 = arith.constant 0 : index
    %315 = vector.load %arg14[%c16_316, %c0_317] : memref<36x768xbf16, #tpu.memory_space<vmem>>, vector<4x768xbf16>
    %cst_318 = arith.constant dense<0.000000e+00> : vector<8x768xf32>
    %316 = tpu.matmul %314, %315, %cst_318 {dimension_numbers = #tpu.dot_dimension_numbers<[1], [0], [0], [1], [0, 0, 1, 1], [], []>} : vector<8x4xbf16>, vector<4x768xbf16>, vector<8x768xf32> -> vector<8x768xf32>
    %c0_319 = arith.constant 0 : index
    %c0_320 = arith.constant 0 : index
    %317 = vector.load %arg10[%c0_319, %c0_320] : memref<8x1xf32, #tpu.memory_space<vmem>>, vector<8x1xf32>
    %318 = vector.broadcast %317 : vector<8x1xf32> to vector<8x768xf32>
    %319 = arith.addf %316, %318 : vector<8x768xf32>
    %320 = arith.addf %313, %319 : vector<8x768xf32>
    %321 = vector.extract_strided_slice %320 {offsets = [0, 0], sizes = [8, 384], strides = [1, 1]} : vector<8x768xf32> to vector<8x384xf32>
    %c0_321 = arith.constant 0 : index
    %c0_322 = arith.constant 0 : index
    %c0_323 = arith.constant 0 : index
    %322 = vector.load %arg11[%c0_321, %c0_322, %c0_323] : memref<2x8x384xf32, #tpu.memory_space<vmem>>, vector<1x8x384xf32>
    %323 = vector.shape_cast %322 : vector<1x8x384xf32> to vector<8x384xf32>
    %324 = vector.shape_cast %321 : vector<8x384xf32> to vector<1x8x384xf32>
    tpu.vector_store %arg11[%c0_321, %c0_322, %c0_323], %324 {strides = array<i32>} : memref<2x8x384xf32, #tpu.memory_space<vmem>>, vector<1x8x384xf32>,
    %325 = vector.extract_strided_slice %320 {offsets = [0, 384], sizes = [8, 384], strides = [1, 1]} : vector<8x768xf32> to vector<8x384xf32>
    %c1_324 = arith.constant 1 : index
    %c0_325 = arith.constant 0 : index
    %c0_326 = arith.constant 0 : index
    %326 = vector.load %arg11[%c1_324, %c0_325, %c0_326] : memref<2x8x384xf32, #tpu.memory_space<vmem>>, vector<1x8x384xf32>
    %327 = vector.shape_cast %326 : vector<1x8x384xf32> to vector<8x384xf32>
    %328 = vector.shape_cast %325 : vector<8x384xf32> to vector<1x8x384xf32>
    tpu.vector_store %arg11[%c1_324, %c0_325, %c0_326], %328 {strides = array<i32>} : memref<2x8x384xf32, #tpu.memory_space<vmem>>, vector<1x8x384xf32>,
    return
  }
  func.func @transform_0(%arg0: i32) -> (i32, i32, i32) {
    %c0_i32 = arith.constant 0 : i32
    %c0_i32_0 = arith.constant 0 : i32
    %c0_i32_1 = arith.constant 0 : i32
    return %arg0, %c0_i32, %c0_i32_0 : i32, i32, i32
  }
  func.func @transform_1(%arg0: i32) -> (i32, i32) {
    %c0_i32 = arith.constant 0 : i32
    %c0_i32_0 = arith.constant 0 : i32
    %c0_i32_1 = arith.constant 0 : i32
    return %c0_i32, %c0_i32_0 : i32, i32
  }
  func.func @transform_2(%arg0: i32) -> (i32, i32) {
    %c0_i32 = arith.constant 0 : i32
    %c0_i32_0 = arith.constant 0 : i32
    %c0_i32_1 = arith.constant 0 : i32
    return %c0_i32, %c0_i32_0 : i32, i32
  }
  func.func @transform_3(%arg0: i32) -> (i32, i32) {
    %c0_i32 = arith.constant 0 : i32
    %c0_i32_0 = arith.constant 0 : i32
    %c0_i32_1 = arith.constant 0 : i32
    return %c0_i32, %c0_i32_0 : i32, i32
  }
  func.func @transform_4(%arg0: i32) -> (i32, i32) {
    %c0_i32 = arith.constant 0 : i32
    %c0_i32_0 = arith.constant 0 : i32
    %c0_i32_1 = arith.constant 0 : i32
    return %c0_i32, %c0_i32_0 : i32, i32
  }
  func.func @transform_5(%arg0: i32) -> (i32, i32) {
    %c0_i32 = arith.constant 0 : i32
    %c0_i32_0 = arith.constant 0 : i32
    %c0_i32_1 = arith.constant 0 : i32
    return %c0_i32, %c0_i32_0 : i32, i32
  }
  func.func @transform_6(%arg0: i32) -> (i32, i32) {
    %c0_i32 = arith.constant 0 : i32
    %c0_i32_0 = arith.constant 0 : i32
    %c0_i32_1 = arith.constant 0 : i32
    return %c0_i32, %c0_i32_0 : i32, i32
  }
  func.func @transform_7(%arg0: i32) -> (i32, i32) {
    %c0_i32 = arith.constant 0 : i32
    %c0_i32_0 = arith.constant 0 : i32
    %c0_i32_1 = arith.constant 0 : i32
    return %c0_i32, %c0_i32_0 : i32, i32
  }
  func.func @transform_8(%arg0: i32) -> (i32, i32) {
    %c0_i32 = arith.constant 0 : i32
    %c0_i32_0 = arith.constant 0 : i32
    %c0_i32_1 = arith.constant 0 : i32
    return %c0_i32, %c0_i32_0 : i32, i32
  }
  func.func @transform_9(%arg0: i32) -> (i32, i32) {
    %c0_i32 = arith.constant 0 : i32
    %c0_i32_0 = arith.constant 0 : i32
    %c0_i32_1 = arith.constant 0 : i32
    return %c0_i32, %c0_i32_0 : i32, i32
  }
  func.func @transform_10(%arg0: i32) -> (i32, i32, i32) {
    %c0_i32 = arith.constant 0 : i32
    %c0_i32_0 = arith.constant 0 : i32
    %c0_i32_1 = arith.constant 0 : i32
    return %arg0, %c0_i32, %c0_i32_0 : i32, i32, i32
  }
}

</mosaic_0001>

<bundles_post_ra>
// kernel: tpu_custom_call.1
= control target key start
LH: loop header
LB: loop body
LE: loop exit
PB: predicated region body
PF: predicated region fallthrough
CT: control target
= control target key end

     0   :  { %v56_v0 = vlaneseq  ;;  %v2599_v2 = vmov 1983009808   ;;  %s2600_s25 = smov 57   ;;  %s2601_s26 = smov 25   ;;  %s3301_s0 = inlined_call_operand.vmem [shape: f32[2,4,256], index: 0, kind: input, shape index: {}]   ;;  %s3302_s1 = inlined_call_operand.vmem [shape: f32[1,384], index: 1, kind: input, shape index: {}]   ;;  %s3303_s2 = inlined_call_operand.vmem [shape: bf16[8,36], index: 2, kind: input, shape index: {}]   ;;  %s3304_s3 = inlined_call_operand.vmem [shape: f32[8,1], index: 3, kind: input, shape index: {}]   ;;  %s3305_s4 = inlined_call_operand.vmem [shape: f32[4,1], index: 4, kind: input, shape index: {}]   ;;  %s3306_s5 = inlined_call_operand.vmem [shape: f32[4,1], index: 5, kind: input, shape index: {}]   ;;  %s3307_s6 = inlined_call_operand.vmem [shape: bf16[8,72], index: 6, kind: input, shape index: {}]   ;;  %s3308_s7 = inlined_call_operand.vmem [shape: f32[8,1], index: 7, kind: input, shape index: {}]   ;;  %s3309_s8 = inlined_call_operand.vmem [shape: bf16[8,4], index: 8, kind: input, shape index: {}]   ;;  %s3310_s9 = inlined_call_operand.vmem [shape: f32[8,1], index: 9, kind: input, shape index: {}]   ;;  %s3311_s10 = inlined_call_operand.hbm [shape: f32[2,8,384], index: 10, kind: output, shape index: {}]  }
   0x1   :  { %v110_v1 = vld [vmem:[%s3301_s0] sm:$0xf]  ;;  %v54_v3 = vunpack.c.l.s4 %v2599_v2  ;;  %v190_v22 = vld [vmem:[%s3301_s0 + $0x4] sm:$0xf]  ;;  %s2602_s11 = smov 41   ;;  %s2603_s12 = smov 33  }
   0x2   :  { %v50_v4 = vld [vmem:[%s3301_s0] sm:$0xf]  ;;  %v2689_v5 = vshrl.u32 %v56_v0, 7  ;;  %v111_v9 = vpack.c.bf16 %v110_v1, %v110_v1  ;;  %v191_v24 = vpack.c.bf16 %v190_v22, %v190_v22  ;;  %v175_v28 = vld [vmem:[%s3301_s0 + $0x4] sm:$0xf] }
   0x3   :  { %v80_v6 = vld [vmem:[%s3301_s0] sm:$0xf]  ;;  %v55_v8 = vunpack.c.0.s8 %v54_v3  ;;  %v51_v10 = vpack.c.bf16 %v50_v4, %v50_v4 }
   0x4   :  { %v65_v7 = vld [vmem:[%s3301_s0] sm:$0xf]  ;;  %v81_v12 = vpack.c.bf16 %v80_v6, %v80_v6 }
   0x5   :  { %v2698_v11 = vsub.s32 %v55_v8, %v2689_v5  ;;  %v66_v13 = vpack.c.bf16 %v65_v7, %v65_v7  ;;  %v130_v14 = vld [vmem:[%s3301_s0] sm:$0xf] }
   0x6   :  { %v95_v15 = vld [vmem:[%s3301_s0] sm:$0xf]  ;;  %v131_v18 = vpack.c.bf16 %v130_v14, %v130_v14 }
   0x7   :  { %v119_v16 = vrot.slane %v111_v9, %v2698_v11  ;;  %v59_v17 = vrot.slane %v51_v10, %v2698_v11  ;;  %v89_v19 = vrot.slane %v81_v12, %v2698_v11  ;;  %v74_v20 = vrot.slane %v66_v13, %v2698_v11  ;;  %v145_v23 = vld [vmem:[%s3301_s0] sm:$0xf] }
   0x8   :  { %v96_v21 = vpack.c.bf16 %v95_v15, %v95_v15  ;;  %v139_v25 = vrot.slane %v131_v18, %v2698_v11  ;;  %v146_v27 = vpack.c.bf16 %v145_v23, %v145_v23  ;;  %v160_v29 = vld [vmem:[%s3301_s0] sm:$0xf] }
   0x9   :  { %120 = vrot.lane.b32.xlu1 %v119_v16, %s2600_s25  ;;  %60 = vrot.lane.b32.xlu0 %v59_v17, %s2601_s26 }
   0xa   :  { %v104_v26 = vrot.slane %v96_v21, %v2698_v11 }
   0xd   :  { %90 = vrot.lane.b32.xlu1 %v89_v19, %s2602_s11  ;;  %75 = vrot.lane.b32.xlu0 %v74_v20, %s2603_s12 }
   0xe   :  { %15 = vsyncpa [#allocation7], 0  ;;  %v176_v30 = vpack.c.bf16 %v175_v28, %v175_v28  ;;  %s2604_s17 = smov 65   ;;  %s2605_s18 = smov 49   ;;  %v199_v31 = vrot.slane %v191_v24, %v2698_v11  ;;  %v154_v32 = vrot.slane %v146_v27, %v2698_v11  ;;  %v161_v33 = vpack.c.bf16 %v160_v29, %v160_v29  ;;  %v225_v34 = vld [vmem:[%s3301_s0 + $0x4] sm:$0xf] }
   0xf   :  { %v210_v35 = vld [vmem:[%s3301_s0 + $0x4] sm:$0xf]  ;;  %vm3316_vm0 = vcmask 1041408   ;;  %v226_v36 = vpack.c.bf16 %v225_v34, %v225_v34  ;;  %vm3314_vm1 = vcmask 1043458   ;;  %vm3315_vm2 = vcmask 1045508   ;;  %s2606_s23 = smov 97  }
  0x10   :  { %s2607_s24 = smov 73   ;;  %v184_v37 = vrot.slane %v176_v30, %v2698_v11  ;;  %v169_v38 = vrot.slane %v161_v33, %v2698_v11  ;;  %v211_v39 = vpack.c.bf16 %v210_v35, %v210_v35  ;;  %vm40_vm3 = vmor %vm3314_vm1, %vm3316_vm0  ;;  %vm43_vm4 = vcmask 588806   ;;  %v255_v40 = vld [vmem:[%s3301_s0 + $0x4] sm:$0xf]  ;;  %s2609_s13 = smov 89  }
  0x11   :  { %140 = vrot.lane.b32.xlu1 %v139_v25, %s2604_s17  ;;  %105 = vrot.lane.b32.xlu0 %v104_v26, %s2605_s18  ;;  %v240_v41 = vld [vmem:[%s3301_s0 + $0x4] sm:$0xf]  ;;  %vm42_vm5 = vmor %vm3315_vm2, %vm40_vm3  ;;  %v2608_v42 = vmov 0   ;;  %v234_v43 = vrot.slane %v226_v36, %v2698_v11  ;;  %s2610_s14 = smov 81   ;;  %v256_v45 = vpack.c.bf16 %v255_v40, %v255_v40  ;;  %s2611_s21 = smov 113   ;;  %vm63_vm7 = vcmask 328904  }
  0x12   :  { %vm44_vm6 = vmor %vm43_vm4, %vm42_vm5  ;;  %1211 = vmatprep.mubr.bf16.mxu0 %v2608_v42  ;;  %1252 = vmatprep.mubr.bf16.mxu1 %v2608_v42  ;;  %v219_v44 = vrot.slane %v211_v39, %v2698_v11  ;;  %v241_v46 = vpack.c.bf16 %v240_v41, %v240_v41  ;;  %v285_v47 = vld [vmem:[%s3301_s0 + $0x4] sm:$0xf]  ;;  %s2612_s22 = smov 105   ;;  %v2378_v53 = vld [vmem:[%s3301_s0 + $0x8] sm:$0xf]  ;;  %s3313_s15 = smov 1  }
  0x13   :  { %45 = vst.msk [vmem:[#allocation2] sm:$0xff] %vm44_vm6, %v2608_v42  ;;  %2512 = vset.pattern.permute.xlu0 %v2608_v42  ;;  %2513 = vset.pattern.permute.xlu1 %v2608_v42  ;;  %v270_v48 = vld [vmem:[%s3301_s0 + $0x4] sm:$0xf]  ;;  %v286_v49 = vpack.c.bf16 %v285_v47, %v285_v47  ;;  %v264_v50 = vrot.slane %v256_v45, %v2698_v11  ;;  %v2377_v54 = vld [vmem:[%s3301_s0 + $0x8] sm:$0xf]  ;;  %s3312_s16 = smov 121  }
  0x14   :  { %v249_v51 = vrot.slane %v241_v46, %v2698_v11  ;;  %v271_v52 = vpack.c.bf16 %v270_v48, %v270_v48  ;;  %v586_v55 = vpack.c.bf16 %v2378_v53, %v2378_v53  ;;  %v572_v58 = vpack.c.bf16 %v2377_v54, %v2377_v54  ;;  %v2379_v59 = vld [vmem:[%s3301_s0 + $0x8] sm:$0xf]  ;;  %s2615_s29 = smov 17   ;;  %s2616_s30 = smov 9   ;;  %v2386_v8 = vld [vmem:[%s3301_s0 + $0xc] sm:$0xf] }
  0x15   :  { %200 = vrot.lane.b32.xlu1 %v199_v31, %s2606_s23  ;;  %155 = vrot.lane.b32.xlu0 %v154_v32, %s2607_s24  ;;  %v294_v56 = vrot.slane %v286_v49, %v2698_v11  ;;  %v2381_v60 = vld [vmem:[%s3301_s0 + $0x8] sm:$0xf]  ;;  %v600_v61 = vpack.c.bf16 %v2379_v59, %v2379_v59  ;;  %v700_v10 = vpack.c.bf16 %v2386_v8, %v2386_v8  ;;  %v2385_v15 = vld [vmem:[%s3301_s0 + $0xc] sm:$0xf]  ;;  %vm78_vm8 = vcmask 525704   ;;  %s2622_s27 = smov 127  }
  0x16   :  { %v279_v57 = vrot.slane %v271_v52, %v2698_v11  ;;  %v594_v62 = vrot.slane %v586_v55, %v2698_v11  ;;  %v580_v63 = vrot.slane %v572_v58, %v2698_v11  ;;  %v628_v0 = vpack.c.bf16 %v2381_v60, %v2381_v60  ;;  %v2382_v1 = vld [vmem:[%s3301_s0 + $0x8] sm:$0xf]  ;;  %v2388_v21 = vld [vmem:[%s3301_s0 + $0xc] sm:$0xf] }
  0x17   :  { %v2380_v2 = vld [vmem:[%s3301_s0 + $0x8] sm:$0xf]  ;;  %v608_v3 = vrot.slane %v600_v61, %v2698_v11  ;;  %v644_v6 = vpack.c.bf16 %v2382_v1, %v2382_v1  ;;  %v686_v17 = vpack.c.bf16 %v2385_v15, %v2385_v15  ;;  %v708_v18 = vrot.slane %v700_v10, %v2698_v11  ;;  %v2387_v22 = vld [vmem:[%s3301_s0 + $0xc] sm:$0xf] }
  0x18   :  { %v636_v4 = vrot.slane %v628_v0, %v2698_v11  ;;  %v614_v7 = vpack.c.bf16 %v2380_v2, %v2380_v2  ;;  %v2383_v9 = vld [vmem:[%s3301_s0 + $0x8] sm:$0xf]  ;;  %v730_v23 = vpack.c.bf16 %v2388_v21, %v2388_v21  ;;  %v716_v26 = vpack.c.bf16 %v2387_v22, %v2387_v22  ;;  %v2390_v27 = vld [vmem:[%s3301_s0 + $0xc] sm:$0xf] }
  0x19   :  { %185 = vrot.lane.b32.xlu1 %v184_v37, %s2609_s13  ;;  %170 = vrot.lane.b32.xlu0 %v169_v38, %s2610_s14  ;;  %v652_v12 = vrot.slane %v644_v6, %v2698_v11  ;;  %v658_v14 = vpack.c.bf16 %v2383_v9, %v2383_v9  ;;  %v2384_v16 = vld [vmem:[%s3301_s0 + $0x8] sm:$0xf]  ;;  %v694_v24 = vrot.slane %v686_v17, %v2698_v11  ;;  %v2389_v28 = vld [vmem:[%s3301_s0 + $0xc] sm:$0xf]  ;;  %vm93_vm9 = vcmask 722504  }
  0x1a   :  { %v622_v13 = vrot.slane %v614_v7, %v2698_v11  ;;  %v672_v20 = vpack.c.bf16 %v2384_v16, %v2384_v16  ;;  %v738_v29 = vrot.slane %v730_v23, %v2698_v11  ;;  %v724_v30 = vrot.slane %v716_v26, %v2698_v11  ;;  %v2392_v33 = vld [vmem:[%s3301_s0 + $0xc] sm:$0xf] }
  0x1b   :  { %v666_v19 = vrot.slane %v658_v14, %v2698_v11  ;;  %v758_v31 = vpack.c.bf16 %v2390_v27, %v2390_v27  ;;  %v744_v32 = vpack.c.bf16 %v2389_v28, %v2389_v28  ;;  %v2391_v34 = vld [vmem:[%s3301_s0 + $0xc] sm:$0xf]  ;;  %v786_v35 = vpack.c.bf16 %v2392_v33, %v2392_v33  ;;  %s2617_s0 = smov 78  }
  0x1c   :  { %v680_v25 = vrot.slane %v672_v20, %v2698_v11  ;;  %v772_v38 = vpack.c.bf16 %v2391_v34, %v2391_v34  ;;  %vm126_vm10 = vcmask 1042376   ;;  %vm127_vm11 = vcmask 68610  }
  0x1d   :  { %235 = vrot.lane.b32.xlu1 %v234_v43, %s2611_s21  ;;  %220 = vrot.lane.b32.xlu0 %v219_v44, %s2612_s22  ;;  %v766_v36 = vrot.slane %v758_v31, %v2698_v11  ;;  %v752_v37 = vrot.slane %v744_v32, %v2698_v11  ;;  %v794_v39 = vrot.slane %v786_v35, %v2698_v11  ;;  %vm123_vm12 = vcmask 465920   ;;  %vm2859_vm14 = vmor %vm127_vm11, %vm126_vm10 }
  0x1e   :  { %v780_v40 = vrot.slane %v772_v38, %v2698_v11  ;;  %vm108_vm13 = vcmask 919304   ;;  %vm143_vm15 = vcmask 263304   ;;  %vm158_vm3 = vcmask 460104  }
  0x1f   :  { %vm206_vm4 = vcmask 1042312   ;;  %vm207_vm5 = vcmask 3074   ;;  %vm3318_vm6 = vcmask 656904   ;;  %vm3317_vm10 = vcmask 793600  }
  0x20   :  { %vm188_vm11 = vcmask 853704   ;;  %vm2869_vm1 = vmor %vm207_vm5, %vm206_vm4  ;;  %vm223_vm2 = vcmask 197704   ;;  %vm238_vm0 = vcmask 394504   ;;  %vm253_vm4 = vcmask 591304  }
  0x21   :  { %265 = vrot.lane.b32.xlu1 %v264_v50, %s3313_s15  ;;  %250 = vrot.lane.b32.xlu0 %v249_v51, %s3312_s16  ;;  %vm268_vm5 = vcmask 788104  }
  0x25   :  { %295 = vrot.lane.b32.xlu1 %v294_v56, %s2615_s29  ;;  %280 = vrot.lane.b32.xlu0 %v279_v57, %s2616_s30 }
  0x29   :  { %595 = vrot.lane.b32.xlu1 %v594_v62, %s2603_s12  ;;  %581 = vrot.lane.b32.xlu0 %v580_v63, %s2601_s26 }
  0x2d   :  { %609 = vrot.lane.b32.xlu1 %v608_v3, %s2602_s11  ;;  %637 = vrot.lane.b32.xlu0 %v636_v4, %s2600_s25  ;;  %s2623_s25 = smov 126   ;;  %s2624_s11 = smov 104  }
  0x31   :  { %653 = vrot.lane.b32.xlu1 %v652_v12, %s2604_s17  ;;  %623 = vrot.lane.b32.xlu0 %v622_v13, %s2605_s18 }
  0x35   :  { %709 = vrot.lane.b32.xlu1 %v708_v18, %s2606_s23  ;;  %667 = vrot.lane.b32.xlu0 %v666_v19, %s2607_s24 }
  0x39   :  { %695 = vrot.lane.b32.xlu1 %v694_v24, %s2609_s13  ;;  %681 = vrot.lane.b32.xlu0 %v680_v25, %s2610_s14  ;;  %s3322_s13 = smov 1   ;;  %s3323_s14 = smov 121  }
  0x3d   :  { %739 = vrot.lane.b32.xlu1 %v738_v29, %s2611_s21  ;;  %725 = vrot.lane.b32.xlu0 %v724_v30, %s2612_s22  ;;  %s2618_s21 = smov 102   ;;  %s2619_s22 = smov 79  }
  0x41   :  { %767 = vrot.lane.b32.xlu1 %v766_v36, %s3322_s13  ;;  %753 = vrot.lane.b32.xlu0 %v752_v37, %s3323_s14 }
  0x45   :  { %795 = vrot.lane.b32.xlu1 %v794_v39, %s2615_s29  ;;  %781 = vrot.lane.b32.xlu0 %v780_v40, %s2616_s30  ;;  %s2620_s29 = smov 103   ;;  %s2621_s30 = smov 80  }
  0x7b   :  { %v121_v41 = vpop.permute.xlu1 %120  ;;  %v61_v43 = vpop.permute.xlu0 %60 }
  0x7c   :  { %64 = vst.msk [vmem:[#allocation2] sm:$0x3] %vm63_vm7, %v61_v43  ;;  %v122_v46 = vrot.slane %v121_v41, 6 }
  0x7e   :  { %v124_v50 = vsel %vm123_vm12, %v122_v46, %v121_v41 }
  0x7f   :  { %v91_v44 = vpop.permute.xlu1 %90  ;;  %v76_v45 = vpop.permute.xlu0 %75 }
  0x80   :  { %79 = vst.msk [vmem:[#allocation2] sm:$0x3] %vm78_vm8, %v76_v45 }
  0x81   :  { %94 = vst.msk [vmem:[#allocation2] sm:$0x3] %vm93_vm9, %v91_v44 }
  0x83   :  { %v141_v48 = vpop.permute.xlu1 %140  ;;  %v106_v49 = vpop.permute.xlu0 %105 }
  0x84   :  { %109 = vst.msk [vmem:[#allocation2] sm:$0x3] %vm108_vm13, %v106_v49 }
  0x85   :  { %129 = vst.msk [vmem:[#allocation2] sm:$0xf] %vm2859_vm14, %v124_v50 }
  0x86   :  { %144 = vst.msk [vmem:[#allocation2 + $0x2] sm:$0x3] %vm143_vm15, %v141_v48 }
  0x87   :  { %v201_v51 = vpop.permute.xlu1 %200  ;;  %v156_v52 = vpop.permute.xlu0 %155 }
  0x88   :  { %159 = vst.msk [vmem:[#allocation2 + $0x2] sm:$0x3] %vm158_vm3, %v156_v52  ;;  %v202_v53 = vrot.slane %v201_v51, 6 }
  0x8a   :  { %v204_v57 = vsel %vm3317_vm10, %v202_v53, %v201_v51  ;;  %vm298_vm10 = vcmask 132104  }
  0x8b   :  { %v186_v54 = vpop.permute.xlu1 %185  ;;  %v171_v56 = vpop.permute.xlu0 %170 }
  0x8c   :  { %174 = vst.msk [vmem:[#allocation2 + $0x2] sm:$0x3] %vm3318_vm6, %v171_v56  ;;  %vm283_vm6 = vcmask 984904  }
  0x8d   :  { %189 = vst.msk [vmem:[#allocation2 + $0x2] sm:$0x3] %vm188_vm11, %v186_v54 }
  0x8e   :  { %209 = vst.msk [vmem:[#allocation2 + $0x2] sm:$0xf] %vm2869_vm1, %v204_v57 }
  0x8f   :  { %v236_v58 = vpop.permute.xlu1 %235  ;;  %v221_v59 = vpop.permute.xlu0 %220 }
  0x90   :  { %224 = vst.msk [vmem:[#allocation2 + $0x4] sm:$0x3] %vm223_vm2, %v221_v59 }
  0x91   :  { %239 = vst.msk [vmem:[#allocation2 + $0x4] sm:$0x3] %vm238_vm0, %v236_v58 }
  0x93   :  { %v266_v60 = vpop.permute.xlu1 %265  ;;  %v251_v61 = vpop.permute.xlu0 %250 }
  0x94   :  { %254 = vst.msk [vmem:[#allocation2 + $0x4] sm:$0x3] %vm253_vm4, %v251_v61 }
  0x95   :  { %269 = vst.msk [vmem:[#allocation2 + $0x4] sm:$0x3] %vm268_vm5, %v266_v60 }
  0x97   :  { %v296_v62 = vpop.permute.xlu1 %295  ;;  %v281_v63 = vpop.permute.xlu0 %280 }
  0x98   :  { %299 = vst.msk [vmem:[#allocation2 + $0x6] sm:$0x3] %vm298_vm10, %v296_v62 }
  0x99   :  { %284 = vst.msk [vmem:[#allocation2 + $0x4] sm:$0x3] %vm283_vm6, %v281_v63 }
  0x9b   :  { %v596_v0 = vpop.permute.xlu1 %595  ;;  %v582_v1 = vpop.permute.xlu0 %581 }
  0x9f   :  { %v610_v4 = vpop.permute.xlu1 %609  ;;  %v638_v6 = vpop.permute.xlu0 %637 }
  0xa0   :  { %v300_v2 = vld [vmem:[#allocation2] sm:$0x3f]  ;;  %v639_v7 = vrot.slane %v638_v6, 6 }
  0xa1   :  { %v321_v3 = vld [vmem:[#allocation2] sm:$0xff]  ;;  %2375 = vst.sshfl [vmem:[#allocation4] sm:$0xf pattern:$0x76325410] %v300_v2  ;;  %v302_v9 = vcombine.high %v300_v2, %v300_v2 }
  0xa2   :  { %584 = vst.msk [vmem:[#allocation2] sm:$0x3] %vm63_vm7, %v582_v1  ;;  %v548_v8 = vrot.slane %v321_v3, %v2698_v11  ;;  %v640_v13 = vsel %vm123_vm12, %v639_v7, %v638_v6  ;;  %vm3328_vm7 = vcmask 656904   ;;  %v448_v19 = vcombine.low %v321_v3, %v321_v3 }
  0xa3   :  { %598 = vst.msk [vmem:[#allocation2] sm:$0x3] %vm78_vm8, %v596_v0  ;;  %v654_v10 = vpop.permute.xlu1 %653  ;;  %v624_v12 = vpop.permute.xlu0 %623  ;;  %2376 = vst.sshfl [vmem:[#allocation4 + $0x8] sm:$0x3 pattern:$0x76325410] %v302_v9  ;;  %v541_v20 = vcombine.high %v321_v3, %v321_v3 }
  0xa4   :  { %612 = vst.msk [vmem:[#allocation2] sm:$0x3] %vm93_vm9, %v610_v4  ;;  %556 = vrot.lane.b32.xlu0 %v548_v8, %s2617_s0  ;;  %465 = vrot.lane.b32.xlu1 %v548_v8, %s2618_s21  ;;  %vm3329_vm8 = vcmask 793600   ;;  %v455_v24 = vrot.slane %v448_v19, %v2698_v11  ;;  %vm3320_vm9 = vcmask 850944   ;;  %vm344_vm12 = vcmask 1043456  }
  0xa5   :  { %626 = vst.msk [vmem:[#allocation2] sm:$0x3] %vm108_vm13, %v624_v12  ;;  %v555_v25 = vrot.slane %v541_v20, %v2698_v11  ;;  %vm563_vm13 = vcmask 637952  }
  0xa6   :  { %642 = vst.msk [vmem:[#allocation2] sm:$0xf] %vm2859_vm14, %v640_v13  ;;  %vm439_vm14 = vcmask 842752  }
  0xa7   :  { %656 = vst.msk [vmem:[#allocation2 + $0x2] sm:$0x3] %vm143_vm15, %v654_v10  ;;  %v710_v14 = vpop.permute.xlu1 %709  ;;  %v668_v15 = vpop.permute.xlu0 %667  ;;  %vm501_vm15 = vcmask 654336  }
  0xa8   :  { %527 = vrot.lane.b32.xlu1 %v548_v8, %s2619_s22  ;;  %432 = vrot.lane.b32.xlu0 %v548_v8, %s2620_s29  ;;  %670 = vst.msk [vmem:[#allocation2 + $0x2] sm:$0x3] %vm158_vm3, %v668_v15  ;;  %v711_v16 = vrot.slane %v710_v14, 6  ;;  %vm3321_vm3 = vcmask 1031168  }
  0xaa   :  { %v712_v21 = vsel %vm3329_vm8, %v711_v16, %v710_v14 }
  0xab   :  { %v696_v17 = vpop.permute.xlu1 %695  ;;  %v682_v18 = vpop.permute.xlu0 %681 }
  0xac   :  { %494 = vrot.lane.b32.xlu0 %v548_v8, %s2621_s30  ;;  %340 = vrot.lane.b32.xlu1 %v548_v8, %s2622_s27  ;;  %684 = vst.msk [vmem:[#allocation2 + $0x2] sm:$0x3] %vm3328_vm7, %v682_v18 }
  0xad   :  { %698 = vst.msk [vmem:[#allocation2 + $0x2] sm:$0x3] %vm188_vm11, %v696_v17  ;;  %vm1157_vm11 = vcmask 293888  }
  0xae   :  { %714 = vst.msk [vmem:[#allocation2 + $0x2] sm:$0xf] %vm2869_vm1, %v712_v21  ;;  %vm532_vm1 = vcmask 646144  }
  0xaf   :  { %v740_v22 = vpop.permute.xlu1 %739  ;;  %v726_v23 = vpop.permute.xlu0 %725 }
  0xb0   :  { %370 = vrot.lane.b32.xlu0 %v548_v8, %s2623_s25  ;;  %403 = vrot.lane.b32.xlu1 %v548_v8, %s2624_s11  ;;  %728 = vst.msk [vmem:[#allocation2 + $0x4] sm:$0x3] %vm223_vm2, %v726_v23  ;;  %vm3319_vm2 = vcmask 1039360  }
  0xb1   :  { %742 = vst.msk [vmem:[#allocation2 + $0x4] sm:$0x3] %vm238_vm0, %v740_v22  ;;  %vm470_vm0 = vcmask 834560  }
  0xb3   :  { %v768_v26 = vpop.permute.xlu1 %767  ;;  %v754_v27 = vpop.permute.xlu0 %753 }
  0xb4   :  { %463 = vrot.lane.b32.xlu0 %v455_v24, %s2618_s21  ;;  %558 = vrot.lane.b32.xlu1 %v555_v25, %s2617_s0  ;;  %756 = vst.msk [vmem:[#allocation2 + $0x4] sm:$0x3] %vm253_vm4, %v754_v27 }
  0xb5   :  { %770 = vst.msk [vmem:[#allocation2 + $0x4] sm:$0x3] %vm268_vm5, %v768_v26 }
  0xb7   :  { %v796_v28 = vpop.permute.xlu1 %795  ;;  %v782_v29 = vpop.permute.xlu0 %781 }
  0xb8   :  { %525 = vrot.lane.b32.xlu0 %v455_v24, %s2619_s22  ;;  %434 = vrot.lane.b32.xlu1 %v555_v25, %s2620_s29  ;;  %798 = vst.msk [vmem:[#allocation2 + $0x6] sm:$0x3] %vm298_vm10, %v796_v28 }
  0xb9   :  { %784 = vst.msk [vmem:[#allocation2 + $0x4] sm:$0x3] %vm283_vm6, %v782_v29  ;;  %vm3330_vm6 = vcmask 1041408  }
  0xba   :  { %vm3331_vm10 = vmmov %vm3330_vm6 }
  0xbb   :  { %vm3332_vm4 = vmmov %vm3330_vm6 }
  0xbc   :  { %496 = vrot.lane.b32.xlu1 %v555_v25, %s2621_s30  ;;  %338 = vrot.lane.b32.xlu0 %v455_v24, %s2622_s27  ;;  %vm3333_vm5 = vmmov %vm3332_vm4 }
  0xbd   :  { %vm3334_vm7 = vmmov %vm3332_vm4 }
  0xbe   :  { %vm3335_vm8 = vmmov %vm3332_vm4 }
  0xc0   :  { %372 = vrot.lane.b32.xlu1 %v555_v25, %s2623_s25  ;;  %401 = vrot.lane.b32.xlu0 %v455_v24, %s2624_s11  ;;  %v1030_v30 = vld [vmem:[#allocation2] sm:$0xff] }
  0xc1   :  { %v799_v31 = vld [vmem:[#allocation2] sm:$0x3f]  ;;  %v1039_v32 = vrot.slane %v1030_v30, %v2698_v11  ;;  %v1032_v34 = vcombine.high %v1030_v30, %v1030_v30  ;;  %v942_v36 = vcombine.low %v1030_v30, %v1030_v30 }
  0xc2   :  { %2393 = vst.sshfl [vmem:[#allocation4 + $0xc] sm:$0xf pattern:$0x76325410] %v799_v31  ;;  %v801_v33 = vcombine.high %v799_v31, %v799_v31 }
  0xc3   :  { %v1046_v35 = vrot.slane %v1032_v34, %v2698_v11  ;;  %v949_v37 = vrot.slane %v942_v36, %v2698_v11  ;;  %v1076_v11 = vld [vmem:[%s3304_s3] sm:$0xff] }
  0xc4   :  { %1047 = vrot.lane.b32.xlu0 %v1039_v32, %s2617_s0  ;;  %959 = vrot.lane.b32.xlu1 %v1039_v32, %s2618_s21  ;;  %2394 = vst.sshfl [vmem:[#allocation4 + $0x14] sm:$0x3 pattern:$0x76325410] %v801_v33 }
  0xc8   :  { %1019 = vrot.lane.b32.xlu1 %v1039_v32, %s2619_s22  ;;  %927 = vrot.lane.b32.xlu0 %v1039_v32, %s2620_s29 }
  0xcc   :  { %987 = vrot.lane.b32.xlu0 %v1039_v32, %s2621_s30  ;;  %839 = vrot.lane.b32.xlu1 %v1039_v32, %s2622_s27 }
  0xd0   :  { %867 = vrot.lane.b32.xlu0 %v1039_v32, %s2623_s25  ;;  %1049 = vrot.lane.b32.xlu1 %v1046_v35, %s2617_s0 }
  0xd4   :  { %957 = vrot.lane.b32.xlu0 %v949_v37, %s2618_s21  ;;  %929 = vrot.lane.b32.xlu1 %v1046_v35, %s2620_s29 }
  0xd8   :  { %1017 = vrot.lane.b32.xlu0 %v949_v37, %s2619_s22  ;;  %989 = vrot.lane.b32.xlu1 %v1046_v35, %s2621_s30 }
  0xdc   :  { %869 = vrot.lane.b32.xlu1 %v1046_v35, %s2623_s25  ;;  %837 = vrot.lane.b32.xlu0 %v949_v37, %s2622_s27 }
  0xe0   :  { %899 = vrot.lane.b32.xlu1 %v1039_v32, %s2624_s11  ;;  %897 = vrot.lane.b32.xlu0 %v949_v37, %s2624_s11 }
  0xe4   :  { %1079 = vperm.xlu0 %2512, %v1076_v11  }
 0x116   :  { %v557_v38 = vpop.permute.xlu0 %556  ;;  %v466_v39 = vpop.permute.xlu1 %465 }
 0x117   :  { %v468_v40 = vrot.slane %v466_v39, 4  ;;  %v560_v57 = vrot.slane %v557_v38, 4 }
 0x119   :  { %v472_v41 = vsel %vm470_vm0, %v466_v39, %v468_v40 }
 0x11a   :  { %476 = vst [vmem:[#allocation4 + $0x38] sm:$0xc] %v472_v41  ;;  %v528_v43 = vpop.permute.xlu1 %527  ;;  %v433_v44 = vpop.permute.xlu0 %432 }
 0x11b   :  { %v530_v45 = vrot.slane %v528_v43, 4  ;;  %v436_v3 = vrot.slane %v433_v44, 4 }
 0x11d   :  { %v534_v46 = vsel %vm532_vm1, %v528_v43, %v530_v45 }
 0x11e   :  { %538 = vst [vmem:[#allocation4 + $0x50] sm:$0xc] %v534_v46  ;;  %v495_v47 = vpop.permute.xlu0 %494  ;;  %v341_v48 = vpop.permute.xlu1 %340 }
 0x11f   :  { %v343_v49 = vrot.slane %v341_v48, 4  ;;  %v498_v15 = vrot.slane %v495_v47, 4 }
 0x121   :  { %v348_v50 = vsel %vm3319_vm2, %v341_v48, %v343_v49 }
 0x122   :  { %352 = vst [vmem:[#allocation4 + $0x8] sm:$0xc] %v348_v50  ;;  %v2948_v51 = vpop.permute.xlu0 %370  ;;  %v404_v52 = vpop.permute.xlu1 %403 }
 0x123   :  { %v406_v53 = vrot.slane %v404_v52, 4  ;;  %v374_v21 = vrot.slane %v2948_v51, 4 }
 0x125   :  { %v410_v54 = vsel %vm3320_vm9, %v404_v52, %v406_v53 }
 0x126   :  { %414 = vst [vmem:[#allocation4 + $0x20] sm:$0xc] %v410_v54  ;;  %v464_v55 = vpop.permute.xlu0 %463  ;;  %v559_v56 = vpop.permute.xlu1 %558 }
 0x127   :  { %v467_v58 = vrot.slane %v464_v55, 4  ;;  %v561_v59 = vrot.slane %v559_v56, 4 }
 0x129   :  { %v469_v60 = vsel %vm344_vm12, %v467_v58, %v468_v40  ;;  %v562_v61 = vsel %vm344_vm12, %v560_v57, %v561_v59  ;;  %v565_v62 = vsel %vm563_vm13, %v559_v56, %v561_v59 }
 0x12a   :  { %v471_v63 = vsel %vm470_vm0, %v464_v55, %v469_v60  ;;  %v564_v0 = vsel %vm563_vm13, %v557_v38, %v562_v61  ;;  %569 = vst [vmem:[#allocation4 + $0x68] sm:$0x3] %v565_v62  ;;  %v526_v1 = vpop.permute.xlu0 %525  ;;  %v435_v2 = vpop.permute.xlu1 %434 }
 0x12b   :  { %475 = vst [vmem:[#allocation4 + $0x30] sm:$0xcc] %v471_v63  ;;  %568 = vst [vmem:[#allocation4 + $0x60] sm:$0x33] %v564_v0  ;;  %v529_v4 = vrot.slane %v526_v1, 4  ;;  %v437_v6 = vrot.slane %v435_v2, 4 }
 0x12d   :  { %v531_v7 = vsel %vm344_vm12, %v529_v4, %v530_v45  ;;  %v438_v8 = vsel %vm344_vm12, %v436_v3, %v437_v6  ;;  %v441_v9 = vsel %vm439_vm14, %v435_v2, %v437_v6 }
 0x12e   :  { %v533_v10 = vsel %vm532_vm1, %v526_v1, %v531_v7  ;;  %v440_v12 = vsel %vm439_vm14, %v433_v44, %v438_v8  ;;  %445 = vst [vmem:[#allocation4 + $0x38] sm:$0x3] %v441_v9  ;;  %v497_v13 = vpop.permute.xlu1 %496  ;;  %v339_v14 = vpop.permute.xlu0 %338 }
 0x12f   :  { %537 = vst [vmem:[#allocation4 + $0x48] sm:$0xcc] %v533_v10  ;;  %444 = vst [vmem:[#allocation4 + $0x30] sm:$0x33] %v440_v12  ;;  %v499_v16 = vrot.slane %v497_v13, 4  ;;  %v342_v17 = vrot.slane %v339_v14, 4 }
 0x131   :  { %v500_v18 = vsel %vm344_vm12, %v498_v15, %v499_v16  ;;  %v503_v19 = vsel %vm501_vm15, %v497_v13, %v499_v16  ;;  %v345_v20 = vsel %vm344_vm12, %v342_v17, %v343_v49 }
 0x132   :  { %v502_v22 = vsel %vm501_vm15, %v495_v47, %v500_v18  ;;  %507 = vst [vmem:[#allocation4 + $0x50] sm:$0x3] %v503_v19  ;;  %v347_v23 = vsel %vm3319_vm2, %v339_v14, %v345_v20  ;;  %v373_v24 = vpop.permute.xlu1 %372  ;;  %v402_v25 = vpop.permute.xlu0 %401  ;;  %v1073_v26 = vld [vmem:[#allocation4 + $0x60] sm:$0x33] }
 0x133   :  { %506 = vst [vmem:[#allocation4 + $0x48] sm:$0x33] %v502_v22  ;;  %351 = vst [vmem:[#allocation4] sm:$0xcc] %v347_v23  ;;  %v375_v27 = vrot.slane %v373_v24, 4  ;;  %v405_v28 = vrot.slane %v402_v25, 4  ;;  %v2408_v29 = vcombine.high %v1073_v26, %v1073_v26  ;;  %v2407_v30 = vcombine.low %v1073_v26, %v1073_v26 }
 0x135   :  { %v376_v31 = vsel %vm344_vm12, %v374_v21, %v375_v27  ;;  %v379_v32 = vsel %vm3321_vm3, %v373_v24, %v375_v27  ;;  %v407_v33 = vsel %vm344_vm12, %v405_v28, %v406_v53  ;;  %2413 = vmatprep.subr.msk.bf16.mxu0 %vm3330_vm6, %v2408_v29  ;;  %v1162_v34 = vsel %vm3331_vm10, %v2407_v30, 0  ;;  %v2981_v53 = vld [vmem:[%s3303_s2] sm:$0xf] }
 0x136   :  { %v378_v35 = vsel %vm3321_vm3, %v2948_v51, %v376_v31  ;;  %383 = vst [vmem:[#allocation4 + $0x20] sm:$0x3] %v379_v32  ;;  %v409_v36 = vsel %vm3320_vm9, %v402_v25, %v407_v33  ;;  %1190 = vmatpush1.bf16.msra.mxu0 %v1162_v34  ;;  %v1048_v37 = vpop.permute.xlu0 %1047  ;;  %v960_v11 = vpop.permute.xlu1 %959 }
 0x137   :  { %382 = vst [vmem:[#allocation4 + $0x18] sm:$0x33] %v378_v35  ;;  %413 = vst [vmem:[#allocation4 + $0x18] sm:$0xcc] %v409_v36  ;;  %v962_v38 = vrot.slane %v960_v11, 4  ;;  %v1051_v56 = vrot.slane %v1048_v37, 4 }
 0x139   :  { %v965_v39 = vsel %vm470_vm0, %v960_v11, %v962_v38 }
 0x13a   :  { %969 = vst [vmem:[#allocation4 + $0x44] sm:$0xc] %v965_v39  ;;  %v1020_v40 = vpop.permute.xlu1 %1019  ;;  %v928_v41 = vpop.permute.xlu0 %927  ;;  %v2518_v43 = vld [vmem:[#allocation4 + $0x34] ss:$24 sps:$4 sm:$0xff]   ;;  %v2520_v44 = vld [vmem:[#allocation4 + $0x30] ss:$24 sps:$4 sm:$0xff]  }
 0x13b   :  { %v1022_v45 = vrot.slane %v1020_v40, 4  ;;  %1191 = vmatprep.subr.bf16.mxu0 %v2518_v43  ;;  %v931_v63 = vrot.slane %v928_v41, 4 }
 0x13c   :  { %1192 = vmatpush1.bf16.msra.mxu0 %v2520_v44 }
 0x13d   :  { %v1025_v46 = vsel %vm532_vm1, %v1020_v40, %v1022_v45 }
 0x13e   :  { %1029 = vst [vmem:[#allocation4 + $0x5c] sm:$0xc] %v1025_v46  ;;  %v988_v47 = vpop.permute.xlu0 %987  ;;  %v840_v48 = vpop.permute.xlu1 %839  ;;  %v2521_v49 = vld [vmem:[#allocation4 + $0x4] ss:$24 sps:$4 sm:$0xff]   ;;  %v2523_v50 = vld [vmem:[#allocation4] ss:$24 sps:$4 sm:$0xff]  }
 0x13f   :  { %v842_v51 = vrot.slane %v840_v48, 4  ;;  %1193 = vmatprep.subr.bf16.mxu0 %v2521_v49  ;;  %v991_v10 = vrot.slane %v988_v47, 4 }
 0x140   :  { %1194 = vmatpush1.bf16.msra.mxu0 %v2523_v50 }
 0x141   :  { %v845_v52 = vsel %vm3319_vm2, %v840_v48, %v842_v51 }
 0x142   :  { %849 = vst [vmem:[#allocation4 + $0x14] sm:$0xc] %v845_v52  ;;  %v868_v54 = vpop.permute.xlu0 %867  ;;  %v1050_v55 = vpop.permute.xlu1 %1049 }
 0x143   :  { %v1052_v57 = vrot.slane %v1050_v55, 4  ;;  %2414 = vmatmul.mubr.msk.bf16.vlgmr.msra.gmra.mxu0 %vm1157_vm11, %v2981_v53  ;;  %v871_v17 = vrot.slane %v868_v54, 4 }
 0x144   :  { %1293 = vmatprep.mubr.bf16.mxu0 %v2608_v42 }
 0x145   :  { %v1053_v58 = vsel %vm344_vm12, %v1051_v56, %v1052_v57  ;;  %v1055_v59 = vsel %vm563_vm13, %v1050_v55, %v1052_v57 }
 0x146   :  { %v1054_v60 = vsel %vm563_vm13, %v1048_v37, %v1053_v58  ;;  %1059 = vst [vmem:[#allocation4 + $0x74] sm:$0x3] %v1055_v59  ;;  %v958_v61 = vpop.permute.xlu0 %957  ;;  %v930_v62 = vpop.permute.xlu1 %929  ;;  %v1307_v59 = vsub.s32 0, %v2689_v5 }
 0x147   :  { %1058 = vst [vmem:[#allocation4 + $0x6c] sm:$0x33] %v1054_v60  ;;  %v961_v0 = vrot.slane %v958_v61, 4  ;;  %v932_v1 = vrot.slane %v930_v62, 4  ;;  %v1311_v60 = vsub.s32 1, %v2689_v5 }
 0x149   :  { %v963_v2 = vsel %vm344_vm12, %v961_v0, %v962_v38  ;;  %v933_v3 = vsel %vm344_vm12, %v931_v63, %v932_v1  ;;  %v935_v4 = vsel %vm439_vm14, %v930_v62, %v932_v1 }
 0x14a   :  { %v964_v6 = vsel %vm470_vm0, %v958_v61, %v963_v2  ;;  %v934_v7 = vsel %vm439_vm14, %v928_v41, %v933_v3  ;;  %939 = vst [vmem:[#allocation4 + $0x44] sm:$0x3] %v935_v4  ;;  %v1018_v8 = vpop.permute.xlu0 %1017  ;;  %v990_v9 = vpop.permute.xlu1 %989  ;;  %v37_v61 = vld [vmem:[%s3302_s1] sm:$0x7]  ;;  %v1315_v2 = vsub.s32 2, %v2689_v5 }
 0x14b   :  { %968 = vst [vmem:[#allocation4 + $0x3c] sm:$0xcc] %v964_v6  ;;  %938 = vst [vmem:[#allocation4 + $0x3c] sm:$0x33] %v934_v7  ;;  %v1021_v12 = vrot.slane %v1018_v8, 4  ;;  %v992_v13 = vrot.slane %v990_v9, 4  ;;  %v3022_v63 = vrot.slane %v37_v61, %v1307_v59 }
 0x14c   :  { %v3035_v6 = vrot.slane %v37_v61, %v1315_v2 }
 0x14d   :  { %v1023_v14 = vsel %vm344_vm12, %v1021_v12, %v1022_v45  ;;  %v993_v15 = vsel %vm344_vm12, %v991_v10, %v992_v13  ;;  %v995_v16 = vsel %vm501_vm15, %v990_v9, %v992_v13 }
 0x14e   :  { %v1024_v18 = vsel %vm532_vm1, %v1018_v8, %v1023_v14  ;;  %v994_v19 = vsel %vm501_vm15, %v988_v47, %v993_v15  ;;  %999 = vst [vmem:[#allocation4 + $0x5c] sm:$0x3] %v995_v16  ;;  %v870_v20 = vpop.permute.xlu1 %869  ;;  %v838_v21 = vpop.permute.xlu0 %837  ;;  %v1074_v22 = vld [vmem:[#allocation4 + $0x68] sm:$0x33]  ;;  %v1075_v23 = vld [vmem:[#allocation4 + $0x70] sm:$0x33] }
 0x14f   :  { %1028 = vst [vmem:[#allocation4 + $0x54] sm:$0xcc] %v1024_v18  ;;  %998 = vst [vmem:[#allocation4 + $0x54] sm:$0x33] %v994_v19  ;;  %v872_v24 = vrot.slane %v870_v20, 4  ;;  %v841_v25 = vrot.slane %v838_v21, 4  ;;  %v2410_v26 = vcombine.high %v1074_v22, %v1074_v22  ;;  %v2412_v27 = vcombine.high %v1075_v23, %v1075_v23 }
 0x150   :  { %v2409_v28 = vcombine.low %v1074_v22, %v1074_v22  ;;  %v2411_v29 = vcombine.low %v1075_v23, %v1075_v23  ;;  %v2533_v47 = vld [vmem:[#allocation4 + $0x38] ss:$24 sps:$4 sm:$0xff]  }
 0x151   :  { %v873_v30 = vsel %vm344_vm12, %v871_v17, %v872_v24  ;;  %v875_v31 = vsel %vm3321_vm3, %v870_v20, %v872_v24  ;;  %v843_v32 = vsel %vm344_vm12, %v841_v25, %v842_v51  ;;  %2415 = vmatprep.subr.msk.bf16.mxu1 %vm3332_vm4, %v2410_v26  ;;  %2417 = vmatprep.subr.msk.bf16.mxu0 %vm3333_vm5, %v2412_v27  ;;  %vm48_vm4 = vcmask 584904  }
 0x152   :  { %v874_v33 = vsel %vm3321_vm3, %v868_v54, %v873_v30  ;;  %879 = vst [vmem:[#allocation4 + $0x2c] sm:$0x3] %v875_v31  ;;  %v844_v34 = vsel %vm3319_vm2, %v838_v21, %v843_v32  ;;  %v1168_v35 = vsel %vm3334_vm7, %v2409_v28, 0  ;;  %v900_v36 = vpop.permute.xlu1 %899  ;;  %v898_v37 = vpop.permute.xlu0 %897  ;;  %v1174_v11 = vsel %vm3335_vm8, %v2411_v29, 0  ;;  %49 = vst.msk [vmem:[#allocation3 + $0xc] sm:$0xf] %vm48_vm4, %v2608_v42 }
 0x153   :  { %878 = vst [vmem:[#allocation4 + $0x24] sm:$0x33] %v874_v33  ;;  %848 = vst [vmem:[#allocation4 + $0xc] sm:$0xcc] %v844_v34  ;;  %1231 = vmatpush1.bf16.msra.mxu1 %v1168_v35  ;;  %v902_v38 = vrot.slane %v900_v36, 4  ;;  %v901_v39 = vrot.slane %v898_v37, 4  ;;  %1272 = vmatpush1.bf16.msra.mxu0 %v1174_v11 }
 0x154   :  { %vm1443_vm2 = vcmask 1043658   ;;  %vm1447_vm3 = vcmask 203782  }
 0x155   :  { %v905_v40 = vsel %vm3320_vm9, %v900_v36, %v902_v38  ;;  %v903_v41 = vsel %vm344_vm12, %v901_v39, %v902_v38  ;;  %v2532_v46 = vld [vmem:[#allocation4 + $0x44] ss:$24 sps:$4 sm:$0xff]  }
 0x156   :  { %909 = vst [vmem:[#allocation4 + $0x2c] sm:$0xc] %v905_v40  ;;  %v904_v43 = vsel %vm3320_vm9, %v898_v37, %v903_v41  ;;  %v2528_v44 = vld [vmem:[#allocation4 + $0x3c] ss:$24 sps:$4 sm:$0xff]   ;;  %v2530_v45 = vld [vmem:[#allocation4 + $0x40] ss:$24 sps:$4 sm:$0xff]   ;;  %1273 = vmatprep.subr.bf16.mxu0 %v2532_v46 }
 0x157   :  { %908 = vst [vmem:[#allocation4 + $0x24] sm:$0xcc] %v904_v43  ;;  %1232 = vmatprep.subr.bf16.mxu1 %v2528_v44  ;;  %1274 = vmatpush1.bf16.msra.mxu0 %v2530_v45  ;;  %vm1444_vm9 = vcmask 1047558  }
 0x158   :  { %1233 = vmatpush1.bf16.msra.mxu1 %v2533_v47 }
 0x15a   :  { %v1062_v48 = vld [vmem:[#allocation4 + $0x8] sm:$0xff] }
 0x15d   :  { %v2538_v52 = vld [vmem:[#allocation4 + $0x14] ss:$24 sps:$4 sm:$0xff]  }
 0x15e   :  { %v1065_v49 = vld [vmem:[#allocation4 + $0x20] sm:$0xff]  ;;  %v2536_v51 = vld [vmem:[#allocation4 + $0x10] ss:$24 sps:$4 sm:$0xff]   ;;  %1275 = vmatprep.subr.bf16.mxu0 %v2538_v52 }
 0x15f   :  { %v2534_v50 = vld [vmem:[#allocation4 + $0xc] ss:$24 sps:$4 sm:$0xff]   ;;  %v2397_v54 = vcombine.low %v1062_v48, %v1065_v49  ;;  %1276 = vmatpush1.bf16.msra.mxu0 %v2536_v51  ;;  %v1080_v62 = vpop.permute.xlu0 %1079 }
 0x160   :  { %1234 = vmatprep.subr.bf16.mxu1 %v2534_v50 }
 0x161   :  { %1235 = vmatpush1.bf16.msra.mxu1 %v2397_v54 }
 0x162   :  { %2418 = vmatmul.mubr.msk.bf16.vlgmr.msra.gmra.mxu0 %vm1157_vm11, %v2981_v53 }
 0x163   :  { %2108 = vmatprep.mubr.bf16.mxu0 %v2608_v42 }
 0x164   :  { %2416 = vmatmul.mubr.msk.bf16.vlgmr.msra.gmra.mxu1 %vm1157_vm11, %v2981_v53  ;;  %v3024_v53 = vrot.slane %v37_v61, %v1311_v60  ;;  %vm46_vm11 = vcmask 199680  }
 0x165   :  { %2067 = vmatprep.mubr.bf16.mxu1 %v2608_v42  ;;  %47 = vst.msk [vmem:[#allocation3] sm:$0xf] %vm46_vm11, %v2608_v42 }
 0x203   :  { %v1213_v55 = vpop.f32.mrf.mxu0 }
 0x204   :  { %v3026_v0 = vadd.f32 %v1213_v55, %v1080_v62 }
 0x205   :  { %v1215_v56 = vpop.f32.mrf.mxu0 }
 0x206   :  { %v3028_v1 = vadd.f32 %v1215_v56, %v1080_v62  ;;  %v1320_v3 = vmul.f32 %v3022_v63, %v3026_v0  ;;  %vm1409_vm6 = vcmp.ge.f32.partialorder %v3026_v0, 0.0 }
 0x207   :  { %v1217_v57 = vpop.f32.mrf.mxu0 }
 0x208   :  { %v1321_v4 = vmul.f32 %v3024_v53, %v3028_v1  ;;  %v1324_v10 = vsel %vm344_vm12, %v1320_v3, 0.0  ;;  %vm1410_vm10 = vcmp.ge.f32.partialorder %v3028_v1, 0.0 }
 0x209   :  { %v1218_v58 = vpop.f32.mrf.mxu0 }
 0x20a   :  { %v1325_v12 = vsel %vm344_vm12, %v1321_v4, 0.0 }
 0x20b   :  { %v1326_v19 = vadd.f32 %v1325_v12, %v1324_v10 }
 0x222   :  { %v1295_v9 = vpop.f32.mrf.mxu0 }
 0x223   :  { %v3041_v13 = vadd.f32 %v1295_v9, %v1080_v62 }
 0x224   :  { %v1254_v7 = vpop.f32.mrf.mxu1  ;;  %v1297_v15 = vpop.f32.mrf.mxu0 }
 0x225   :  { %v3037_v8 = vadd.f32 %v1254_v7, %v1080_v62  ;;  %v3047_v17 = vadd.f32 %v1297_v15, %v1080_v62  ;;  %v1591_v20 = vmul.f32 %v3024_v53, %v3041_v13  ;;  %v1303_v7 = vld [vmem:[%s3306_s5] sm:$0xf] }
 0x226   :  { %v1256_v14 = vpop.f32.mrf.mxu1  ;;  %v1299_v23 = vpop.f32.mrf.mxu0 }
 0x227   :  { %v3043_v5 = vadd.f32 %v1256_v14, %v1080_v62  ;;  %v1322_v16 = vmul.f32 %v3035_v6, %v3037_v8  ;;  %v1592_v26 = vmul.f32 %v3035_v6, %v3047_v17  ;;  %v1594_v28 = vsel %vm344_vm12, %v1591_v20, 0.0 }
 0x228   :  { %v1258_v18 = vpop.f32.mrf.mxu1  ;;  %v1300_v29 = vpop.f32.mrf.mxu0  ;;  %v1412_v23 = vmul.f32 0.1, %v3026_v0  ;;  %vm1411_vm5 = vcmp.ge.f32.partialorder %v3037_v8, 0.0 }
 0x229   :  { %v1327_v21 = vsel %vm344_vm12, %v1322_v16, 0.0  ;;  %v1590_v22 = vmul.f32 %v3022_v63, %v3043_v5  ;;  %v1596_v31 = vsel %vm344_vm12, %v1592_v26, 0.0  ;;  %v1302_v18 = vld [vmem:[%s3305_s4] sm:$0xf] }
 0x22a   :  { %v1259_v24 = vpop.f32.mrf.mxu1  ;;  %v1328_v25 = vadd.f32 %v1327_v21, %v1326_v19 }
 0x22b   :  { %v1593_v27 = vsel %vm344_vm12, %v1590_v22, 0.0  ;;  %v1413_v24 = vmul.f32 0.1, %v3028_v1 }
 0x22c   :  { %1329 = vadd.xlane.f32.xlu1 %v1328_v25  ;;  %v1595_v30 = vadd.f32 %v1594_v28, %v1593_v27  ;;  %v1415_v25 = vsel %vm1409_vm6, %v3026_v0, %v1412_v23  ;;  %v1414_v27 = vmul.f32 0.1, %v3037_v8 }
 0x22d   :  { %v1416_v28 = vsel %vm1410_vm10, %v3028_v1, %v1413_v24 }
 0x22e   :  { %v1597_v32 = vadd.f32 %v1596_v31, %v1595_v30 }
 0x230   :  { %1598 = vadd.xlane.f32.xlu0 %v1597_v32 }
 0x2b5   :  { %v1330_v33 = vpop.xlane.xlu1 %1329 }
 0x2b6   :  { %v1331_v34 = vmul.f32 0.00390625, %v1330_v33 }
 0x2b8   :  { %v1332_v35 = vsub.f32 %v3026_v0, %v1331_v34  ;;  %v1333_v36 = vsub.f32 %v3028_v1, %v1331_v34  ;;  %v1334_v37 = vsub.f32 %v3037_v8, %v1331_v34  ;;  %v1418_v1 = vmul.f32 %v1415_v25, %v3022_v63 }
 0x2b9   :  { %v1599_v11 = vpop.xlane.xlu0 %1598 }
 0x2ba   :  { %v1335_v38 = vmul.f32 %v1332_v35, %v3022_v63  ;;  %v1336_v39 = vmul.f32 %v1333_v36, %v3024_v53  ;;  %v1600_v40 = vmul.f32 0.00390625, %v1599_v11  ;;  %v1337_v41 = vmul.f32 %v1334_v37, %v3035_v6 }
 0x2bb   :  { %v1417_v36 = vsel %vm1411_vm5, %v3037_v8, %v1414_v27  ;;  %v1419_v37 = vmul.f32 %v1416_v28, %v3024_v53  ;;  %vm1670_vm5 = vcmp.ge.f32.partialorder %v3047_v17, 0.0 }
 0x2bc   :  { %v1601_v43 = vsub.f32 %v3043_v5, %v1600_v40  ;;  %v1602_v44 = vsub.f32 %v3041_v13, %v1600_v40  ;;  %v1603_v45 = vsub.f32 %v3047_v17, %v1600_v40  ;;  %v1338_v46 = vmul.f32 %v1335_v38, %v1335_v38 }
 0x2bd   :  { %v1339_v47 = vmul.f32 %v1336_v39, %v1336_v39  ;;  %v1340_v48 = vmul.f32 %v1337_v41, %v1337_v41 }
 0x2be   :  { %v1604_v49 = vmul.f32 %v1601_v43, %v3022_v63  ;;  %v1605_v50 = vmul.f32 %v1602_v44, %v3024_v53  ;;  %v1341_v51 = vsel %vm344_vm12, %v1338_v46, 0.0  ;;  %v1606_v52 = vmul.f32 %v1603_v45, %v3035_v6 }
 0x2bf   :  { %v1342_v54 = vsel %vm344_vm12, %v1339_v47, 0.0  ;;  %v1344_v59 = vsel %vm344_vm12, %v1340_v48, 0.0 }
 0x2c0   :  { %v1343_v55 = vadd.f32 %v1342_v54, %v1341_v51  ;;  %v1607_v56 = vmul.f32 %v1604_v49, %v1604_v49  ;;  %v1608_v57 = vmul.f32 %v1605_v50, %v1605_v50  ;;  %v1609_v58 = vmul.f32 %v1606_v52, %v1606_v52 }
 0x2c2   :  { %v1345_v60 = vadd.f32 %v1344_v59, %v1343_v55  ;;  %v1610_v61 = vsel %vm344_vm12, %v1607_v56, 0.0  ;;  %v1611_v62 = vsel %vm344_vm12, %v1608_v57, 0.0  ;;  %v1613_v3 = vsel %vm344_vm12, %v1609_v58, 0.0 }
 0x2c3   :  { %v1612_v2 = vadd.f32 %v1611_v62, %v1610_v61  ;;  %v1420_v58 = vmul.f32 %v1417_v36, %v3035_v6  ;;  %v1673_v59 = vmul.f32 0.1, %v3047_v17 }
 0x2c4   :  { %1346 = vadd.xlane.f32.xlu1 %v1345_v60 }
 0x2c5   :  { %v1614_v4 = vadd.f32 %v1613_v3, %v1612_v2  ;;  %v1671_v2 = vmul.f32 0.1, %v3043_v5  ;;  %v2477_v3 = vpack.c.bf16 %v1419_v37, %v1418_v1 }
 0x2c7   :  { %1615 = vadd.xlane.f32.xlu0 %v1614_v4  ;;  %v1672_v4 = vmul.f32 0.1, %v3041_v13 }
 0x2dd   :  { %1362 = vperm.xlu0 %2512, %v1303_v7   ;;  %v2478_v7 = vpack.c.bf16 %v1420_v58, %v1420_v58 }
 0x34d   :  { %v1347_v9 = vpop.xlane.xlu1 %1346 }
 0x34e   :  { %v1348_v10 = vmul.f32 0.00390625, %v1347_v9 }
 0x350   :  { %v1349_v12 = vadd.f32 1e-05, %v1348_v10  ;;  %v1616_v14 = vpop.xlane.xlu0 %1615 }
 0x351   :  { %v1617_v15 = vmul.f32 0.00390625, %v1616_v14  ;;  %v1676_v14 = vsel %vm1670_vm5, %v3047_v17, %v1673_v59 }
 0x352   :  { %2573 = vrsqrt.f32 %v1349_v12 }
 0x353   :  { %v1618_v16 = vadd.f32 1e-05, %v1617_v15 }
 0x355   :  { %2575 = vrsqrt.f32 %v1618_v16 }
 0x358   :  { %v1363_v32 = vpop.permute.xlu0 %1362 }
 0x35f   :  { %v2574_v19 = vpop.eup %2573 }
 0x360   :  { %v1351_v20 = vmul.f32 %v2574_v19, %v1302_v18 }
 0x362   :  { %v2576_v21 = vpop.eup %2575  ;;  %1354 = vperm.xlu1 %2513, %v1351_v20   ;;  %v1679_v20 = vmul.f32 %v1676_v14, %v3035_v6 }
 0x363   :  { %v1620_v22 = vmul.f32 %v2576_v21, %v1302_v18 }
 0x366   :  { %1623 = vperm.xlu1 %2513, %v1620_v22   ;;  %v2482_v22 = vpack.c.bf16 %v1679_v20, %v1679_v20 }
 0x3dd   :  { %v1355_v26 = vpop.permute.xlu1 %1354 }
 0x3de   :  { %v1357_v29 = vmul.f32 %v1355_v26, %v1335_v38  ;;  %v1358_v30 = vmul.f32 %v1355_v26, %v1336_v39  ;;  %v1359_v31 = vmul.f32 %v1355_v26, %v1337_v41 }
 0x3e0   :  { %v1365_v33 = vadd.f32 %v1363_v32, %v1357_v29  ;;  %v1366_v34 = vadd.f32 %v1363_v32, %v1358_v30  ;;  %v1367_v0 = vadd.f32 %v1363_v32, %v1359_v31 }
 0x3e1   :  { %v1624_v35 = vpop.permute.xlu1 %1623 }
 0x3e2   :  { %v1371_v11 = vmul.f32 0.1, %v1365_v33  ;;  %v1372_v38 = vmul.f32 0.1, %v1366_v34  ;;  %v1626_v39 = vmul.f32 %v1624_v35, %v1604_v49  ;;  %v1627_v40 = vmul.f32 %v1624_v35, %v1605_v50 }
 0x3e3   :  { %v1628_v41 = vmul.f32 %v1624_v35, %v1606_v52  ;;  %vm1370_vm7 = vcmp.ge.f32.partialorder %v1367_v0, 0.0  ;;  %v1373_v43 = vmul.f32 0.1, %v1367_v0  ;;  %vm1368_vm8 = vcmp.ge.f32.partialorder %v1365_v33, 0.0 }
 0x3e4   :  { %v1629_v44 = vadd.f32 %v1626_v39, %v1363_v32  ;;  %v1630_v45 = vadd.f32 %v1627_v40, %v1363_v32  ;;  %vm1369_vm6 = vcmp.ge.f32.partialorder %v1366_v34, 0.0  ;;  %v1374_v46 = vsel %vm1368_vm8, %v1365_v33, %v1371_v11 }
 0x3e5   :  { %v1631_v47 = vadd.f32 %v1628_v41, %v1363_v32  ;;  %v1376_v48 = vsel %vm1370_vm7, %v1367_v0, %v1373_v43  ;;  %v1375_v51 = vsel %vm1369_vm6, %v1366_v34, %v1372_v38  ;;  %v1377_v8 = vmul.f32 %v1374_v46, %v3022_v63 }
 0x3e6   :  { %v1635_v54 = vmul.f32 0.1, %v1629_v44  ;;  %v1636_v55 = vmul.f32 0.1, %v1630_v45  ;;  %v1379_v56 = vmul.f32 %v1376_v48, %v3035_v6  ;;  %v1378_v49 = vmul.f32 %v1375_v51, %v3024_v53 }
 0x3e7   :  { %vm1634_vm10 = vcmp.ge.f32.partialorder %v1631_v47, 0.0  ;;  %v1637_v50 = vmul.f32 0.1, %v1631_v47  ;;  %vm1632_vm11 = vcmp.ge.f32.partialorder %v1629_v44, 0.0  ;;  %vm1633_vm4 = vcmp.ge.f32.partialorder %v1630_v45, 0.0 }
 0x3e8   :  { %v2476_v52 = vpack.c.bf16 %v1379_v56, %v1379_v56  ;;  %v2475_v57 = vpack.c.bf16 %v1378_v49, %v1377_v8  ;;  %v1638_v61 = vsel %vm1632_vm11, %v1629_v44, %v1635_v54  ;;  %v1639_v62 = vsel %vm1633_vm4, %v1630_v45, %v1636_v55 }
 0x3e9   :  { %v1640_v60 = vsel %vm1634_vm10, %v1631_v47, %v1637_v50  ;;  %vm1668_vm7 = vcmp.ge.f32.partialorder %v3043_v5, 0.0  ;;  %vm1669_vm8 = vcmp.ge.f32.partialorder %v3041_v13, 0.0  ;;  %v1641_v10 = vmul.f32 %v1638_v61, %v3022_v63  ;;  %v1872_v50 = vld [vmem:[%s3308_s7] sm:$0xff] }
 0x3ea   :  { %1393 = vrot.lane.b32.xlu0 %v2476_v52, %s2601_s26  ;;  %1391 = vrot.lane.b32.xlu1 %v2475_v57, %s2601_s26  ;;  %v1643_v9 = vmul.f32 %v1640_v60, %v3035_v6  ;;  %v1642_v12 = vmul.f32 %v1639_v62, %v3024_v53  ;;  %v1674_v15 = vsel %vm1668_vm7, %v3043_v5, %v1671_v2  ;;  %vm1403_vm6 = vcmask 1041608   ;;  %v2180_v52 = vld [vmem:[%s3310_s9] sm:$0xff] }
 0x3eb   :  { %v1675_v16 = vsel %vm1669_vm8, %v3041_v13, %v1672_v4  ;;  %v1677_v21 = vmul.f32 %v1674_v15, %v3022_v63  ;;  %vm1406_vm10 = vcmask 201732   ;;  %vm1397_vm11 = vcmask 203776  }
 0x3ec   :  { %v2480_v18 = vpack.c.bf16 %v1643_v9, %v1643_v9  ;;  %v2479_v19 = vpack.c.bf16 %v1642_v12, %v1641_v10  ;;  %v1678_v17 = vmul.f32 %v1675_v16, %v3024_v53  ;;  %vm3336_vm4 = vcmask 1045508  }
 0x3ed   :  { %vm3124_vm5 = vmor %vm3336_vm4, %vm1403_vm6  ;;  %vm3339_vm7 = vcmask 1041408  }
 0x3ee   :  { %1434 = vrot.lane.b32.xlu0 %v2478_v7, %s2601_s26  ;;  %1432 = vrot.lane.b32.xlu1 %v2477_v3, %s2601_s26  ;;  %v2481_v5 = vpack.c.bf16 %v1678_v17, %v1677_v21  ;;  %vm3129_vm8 = vmor %vm1406_vm10, %vm3339_vm7  ;;  %vm3344_vm10 = vcmask 1043458  }
 0x3ef   :  { %vm3140_vm6 = vmor %vm1444_vm9, %vm1443_vm2  ;;  %vm3347_vm2 = vcmask 1031168  }
 0x3f0   :  { %vm3145_vm4 = vmor %vm1447_vm3, %vm3344_vm10  ;;  %vm3349_vm3 = vcmask 850944  }
 0x3f1   :  { %vm3348_vm9 = vmmov %vm3347_vm2 }
 0x3f2   :  { %1657 = vrot.lane.b32.xlu0 %v2480_v18, %s2601_s26  ;;  %1655 = vrot.lane.b32.xlu1 %v2479_v19, %s2601_s26 }
 0x3f6   :  { %1693 = vrot.lane.b32.xlu0 %v2482_v22, %s2601_s26  ;;  %1691 = vrot.lane.b32.xlu1 %v2481_v5, %s2601_s26 }
 0x45c   :  { %v1394_v13 = vpop.permute.xlu0 %1393  ;;  %v1392_v23 = vpop.permute.xlu1 %1391 }
 0x45d   :  { %v1396_v6 = vrot.slane %v1394_v13, 4  ;;  %v1395_v24 = vrot.slane %v1392_v23, 4 }
 0x45f   :  { %v1398_v25 = vsel %vm1397_vm11, %v1395_v24, %v1392_v23  ;;  %v1399_v26 = vsel %vm344_vm12, %v1395_v24, %v1396_v6 }
 0x460   :  { %v1400_v27 = vsel %vm1397_vm11, %v1399_v26, %v1394_v13  ;;  %1405 = vst.msk [vmem:[#allocation3] sm:$0x33] %vm3124_vm5, %v1398_v25  ;;  %v1435_v28 = vpop.permute.xlu0 %1434  ;;  %v1433_v29 = vpop.permute.xlu1 %1432 }
 0x461   :  { %1408 = vst.msk [vmem:[#allocation3 + $0x8] sm:$0x33] %vm3129_vm8, %v1400_v27  ;;  %v1437_v30 = vrot.slane %v1435_v28, 4  ;;  %v1436_v32 = vrot.slane %v1433_v29, 4 }
 0x463   :  { %v1438_v34 = vsel %vm1397_vm11, %v1436_v32, %v1433_v29  ;;  %v1439_v0 = vsel %vm344_vm12, %v1436_v32, %v1437_v30 }
 0x464   :  { %v1440_v35 = vsel %vm1397_vm11, %v1439_v0, %v1435_v28  ;;  %1446 = vst.msk [vmem:[#allocation3] sm:$0xcc] %vm3140_vm6, %v1438_v34  ;;  %v1658_v36 = vpop.permute.xlu0 %1657  ;;  %v1656_v1 = vpop.permute.xlu1 %1655 }
 0x465   :  { %1449 = vst.msk [vmem:[#allocation3 + $0x8] sm:$0xcc] %vm3145_vm4, %v1440_v35  ;;  %v1660_v37 = vrot.slane %v1658_v36, 4  ;;  %v1659_v11 = vrot.slane %v1656_v1, 4 }
 0x467   :  { %v1662_v40 = vsel %vm344_vm12, %v1659_v11, %v1660_v37  ;;  %v1661_v45 = vsel %vm1397_vm11, %v1659_v11, %v1656_v1 }
 0x468   :  { %v1694_v38 = vpop.permute.xlu0 %1693  ;;  %v1692_v39 = vpop.permute.xlu1 %1691  ;;  %v1663_v51 = vsel %vm1397_vm11, %v1662_v40, %v1658_v36 }
 0x469   :  { %v1696_v41 = vrot.slane %v1694_v38, 4  ;;  %v1695_v43 = vrot.slane %v1692_v39, 4 }
 0x46b   :  { %v3157_v44 = vld [vmem:[#allocation3] sm:$0xff]  ;;  %v1697_v46 = vsel %vm1397_vm11, %v1695_v43, %v1692_v39  ;;  %v1698_v47 = vsel %vm344_vm12, %v1695_v43, %v1696_v41 }
 0x46c   :  { %v1451_v48 = vld [vmem:[#allocation3 + $0x8] sm:$0xf]  ;;  %v1699_v8 = vsel %vm1397_vm11, %v1698_v47, %v1694_v38  ;;  %1577 = vrot.lane.b32.xlu1 %v3157_v44, %s2617_s0  ;;  %1666 = vst.msk [vmem:[#allocation3] sm:$0x33] %vm3124_vm5, %v1661_v45  ;;  %vm3350_vm11 = vmmov %vm3349_vm3  ;;  %vm3351_vm5 = vcmask 1039360  }
 0x46d   :  { %v1574_v54 = vld [vmem:[#allocation3 + $0x8] sm:$0xff]  ;;  %1702 = vst.msk [vmem:[#allocation3] sm:$0xcc] %vm3140_vm6, %v1697_v46  ;;  %1453 = vst [vmem:[#allocation5 + $0x8] sm:$0xf] %v1451_v48 }
 0x46e   :  { %1579 = vrot.lane.b32.xlu0 %v1574_v54, %s2617_s0  ;;  %1667 = vst.msk [vmem:[#allocation3 + $0x8] sm:$0x33] %vm3129_vm8, %v1663_v51  ;;  %vm3352_vm7 = vmmov %vm3351_vm5  ;;  %vm2013_vm8 = vcmask 588800  }
 0x46f   :  { %1703 = vst.msk [vmem:[#allocation3 + $0x8] sm:$0xcc] %vm3145_vm4, %v1699_v8  ;;  %vm3358_vm6 = vmmov %vm3351_vm5 }
 0x470   :  { %1543 = vrot.lane.b32.xlu1 %v3157_v44, %s2621_s30 }
 0x472   :  { %1545 = vrot.lane.b32.xlu0 %v1574_v54, %s2621_s30 }
 0x474   :  { %v1827_v55 = vld [vmem:[#allocation3] sm:$0xff]  ;;  %1560 = vrot.lane.b32.xlu1 %v3157_v44, %s2619_s22 }
 0x475   :  { %1706 = vst [vmem:[#allocation5 + $0xc] sm:$0xff] %v1827_v55 }
 0x476   :  { %v1705_v56 = vld [vmem:[#allocation3 + $0x8] sm:$0xf]  ;;  %1562 = vrot.lane.b32.xlu0 %v1574_v54, %s2619_s22 }
 0x477   :  { %1707 = vst [vmem:[#allocation5 + $0x14] sm:$0xf] %v1705_v56  ;;  %v1828_v49 = vld [vmem:[#allocation3 + $0x8] sm:$0xff] }
 0x478   :  { %1509 = vrot.lane.b32.xlu1 %v3157_v44, %s2620_s29 }
 0x47a   :  { %1511 = vrot.lane.b32.xlu0 %v1574_v54, %s2620_s29 }
 0x47c   :  { %1526 = vrot.lane.b32.xlu1 %v3157_v44, %s2618_s21 }
 0x47e   :  { %1528 = vrot.lane.b32.xlu0 %v1574_v54, %s2618_s21 }
 0x480   :  { %1475 = vrot.lane.b32.xlu1 %v3157_v44, %s2623_s25 }
 0x482   :  { %1477 = vrot.lane.b32.xlu0 %v1574_v54, %s2623_s25 }
 0x484   :  { %1492 = vrot.lane.b32.xlu1 %v3157_v44, %s2624_s11 }
 0x486   :  { %1494 = vrot.lane.b32.xlu0 %v1574_v54, %s2624_s11 }
 0x488   :  { %1458 = vrot.lane.b32.xlu1 %v3157_v44, %s2622_s27 }
 0x48a   :  { %1460 = vrot.lane.b32.xlu0 %v1574_v54, %s2622_s27 }
 0x48c   :  { %1831 = vrot.lane.b32.xlu1 %v1827_v55, %s2617_s0 }
 0x48e   :  { %1833 = vrot.lane.b32.xlu0 %v1828_v49, %s2617_s0 }
 0x490   :  { %1797 = vrot.lane.b32.xlu1 %v1827_v55, %s2621_s30 }
 0x492   :  { %1799 = vrot.lane.b32.xlu0 %v1828_v49, %s2621_s30 }
 0x494   :  { %1814 = vrot.lane.b32.xlu1 %v1827_v55, %s2619_s22 }
 0x496   :  { %1816 = vrot.lane.b32.xlu0 %v1828_v49, %s2619_s22 }
 0x498   :  { %1763 = vrot.lane.b32.xlu1 %v1827_v55, %s2620_s29 }
 0x49a   :  { %1765 = vrot.lane.b32.xlu0 %v1828_v49, %s2620_s29 }
 0x49c   :  { %1780 = vrot.lane.b32.xlu1 %v1827_v55, %s2618_s21 }
 0x49e   :  { %1782 = vrot.lane.b32.xlu0 %v1828_v49, %s2618_s21 }
 0x4a0   :  { %1729 = vrot.lane.b32.xlu1 %v1827_v55, %s2623_s25 }
 0x4a2   :  { %1731 = vrot.lane.b32.xlu0 %v1828_v49, %s2623_s25 }
 0x4a4   :  { %1746 = vrot.lane.b32.xlu1 %v1827_v55, %s2624_s11 }
 0x4a6   :  { %1748 = vrot.lane.b32.xlu0 %v1828_v49, %s2624_s11 }
 0x4a8   :  { %1712 = vrot.lane.b32.xlu1 %v1827_v55, %s2622_s27 }
 0x4aa   :  { %1714 = vrot.lane.b32.xlu0 %v1828_v49, %s2622_s27 }
 0x4ac   :  { %1875 = vperm.xlu1 %2513, %v1872_v50  }
 0x4ae   :  { %2183 = vperm.xlu0 %2512, %v2180_v52  }
 0x4de   :  { %v1578_v57 = vpop.permute.xlu1 %1577 }
 0x4df   :  { %v1581_v58 = vrot.slane %v1578_v57, 4 }
 0x4e0   :  { %v1580_v59 = vpop.permute.xlu0 %1579 }
 0x4e1   :  { %v1582_v60 = vrot.slane %v1580_v59, 4 }
 0x4e2   :  { %v1544_v2 = vpop.permute.xlu1 %1543 }
 0x4e3   :  { %v1583_v61 = vsel %vm344_vm12, %v1581_v58, %v1582_v60  ;;  %v1585_v62 = vsel %vm563_vm13, %v1580_v59, %v1582_v60  ;;  %v1547_v4 = vrot.slane %v1544_v2, 4 }
 0x4e4   :  { %v1584_v3 = vsel %vm563_vm13, %v1578_v57, %v1583_v61  ;;  %1589 = vst [vmem:[#allocation5 + $0xc8] sm:$0xf] %v1585_v62  ;;  %v1546_v7 = vpop.permute.xlu0 %1545 }
 0x4e5   :  { %v1548_v9 = vrot.slane %v1546_v7, 4  ;;  %v2452_v10 = vcombine.high %v1584_v3, %v1584_v3  ;;  %v2451_v12 = vcombine.low %v1584_v3, %v1584_v3 }
 0x4e6   :  { %v1561_v16 = vpop.permute.xlu1 %1560 }
 0x4e7   :  { %v1549_v14 = vsel %vm344_vm12, %v1547_v4, %v1548_v9  ;;  %v1551_v15 = vsel %vm501_vm15, %v1546_v7, %v1548_v9  ;;  %2457 = vmatprep.subr.msk.bf16.mxu1 %vm344_vm12, %v2452_v10  ;;  %v2018_v18 = vsel %vm344_vm12, %v2451_v12, 0  ;;  %v1564_v20 = vrot.slane %v1561_v16, 4 }
 0x4e8   :  { %v1550_v19 = vsel %vm501_vm15, %v1544_v2, %v1549_v14  ;;  %1555 = vst [vmem:[#allocation5 + $0x98] sm:$0xf] %v1551_v15  ;;  %v1563_v21 = vpop.permute.xlu0 %1562  ;;  %2042 = vmatpush1.bf16.msra.mxu1 %v2018_v18 }
 0x4e9   :  { %v1565_v17 = vrot.slane %v1563_v21, 4 }
 0x4ea   :  { %v1510_v13 = vpop.permute.xlu1 %1509 }
 0x4eb   :  { %v1566_v22 = vsel %vm344_vm12, %v1564_v20, %v1565_v17  ;;  %v1568_v5 = vsel %vm532_vm1, %v1563_v21, %v1565_v17  ;;  %v1513_v6 = vrot.slane %v1510_v13, 4 }
 0x4ec   :  { %v1567_v23 = vsel %vm532_vm1, %v1561_v16, %v1566_v22  ;;  %1572 = vst [vmem:[#allocation5 + $0xb0] sm:$0xf] %v1568_v5  ;;  %v1512_v63 = vpop.permute.xlu0 %1511  ;;  %v3252_v16 = vld [vmem:[%s3307_s6] sm:$0xf] }
 0x4ed   :  { %v1514_v24 = vrot.slane %v1512_v63, 4  ;;  %v2445_v53 = vcombine.low %v1550_v19, %v1567_v23  ;;  %v2446_v25 = vcombine.high %v1550_v19, %v1567_v23 }
 0x4ee   :  { %v1527_v28 = vpop.permute.xlu1 %1526 }
 0x4ef   :  { %v1515_v26 = vsel %vm344_vm12, %v1513_v6, %v1514_v24  ;;  %v1517_v27 = vsel %vm439_vm14, %v1512_v63, %v1514_v24  ;;  %2043 = vmatprep.subr.bf16.mxu1 %v2446_v25  ;;  %v1530_v30 = vrot.slane %v1527_v28, 4 }
 0x4f0   :  { %v1516_v29 = vsel %vm439_vm14, %v1510_v13, %v1515_v26  ;;  %1521 = vst [vmem:[#allocation5 + $0x68] sm:$0xf] %v1517_v27  ;;  %v1529_v31 = vpop.permute.xlu0 %1528  ;;  %2044 = vmatpush1.bf16.msra.mxu1 %v2445_v53 }
 0x4f1   :  { %v1531_v32 = vrot.slane %v1529_v31, 4 }
 0x4f2   :  { %v1476_v0 = vpop.permute.xlu1 %1475 }
 0x4f3   :  { %v1532_v33 = vsel %vm344_vm12, %v1530_v30, %v1531_v32  ;;  %v1534_v34 = vsel %vm470_vm0, %v1529_v31, %v1531_v32  ;;  %v1479_v36 = vrot.slane %v1476_v0, 4 }
 0x4f4   :  { %v1533_v35 = vsel %vm470_vm0, %v1527_v28, %v1532_v33  ;;  %1538 = vst [vmem:[#allocation5 + $0x80] sm:$0xf] %v1534_v34  ;;  %v1478_v1 = vpop.permute.xlu0 %1477 }
 0x4f5   :  { %v1480_v37 = vrot.slane %v1478_v1, 4  ;;  %v2439_v11 = vcombine.low %v1516_v29, %v1533_v35  ;;  %v2440_v38 = vcombine.high %v1516_v29, %v1533_v35 }
 0x4f6   :  { %v1493_v41 = vpop.permute.xlu1 %1492 }
 0x4f7   :  { %v1481_v39 = vsel %vm344_vm12, %v1479_v36, %v1480_v37  ;;  %v1483_v40 = vsel %vm3347_vm2, %v1478_v1, %v1480_v37  ;;  %2045 = vmatprep.subr.bf16.mxu1 %v2440_v38  ;;  %v1496_v45 = vrot.slane %v1493_v41, 4 }
 0x4f8   :  { %v1482_v43 = vsel %vm3348_vm9, %v1476_v0, %v1481_v39  ;;  %1487 = vst [vmem:[#allocation5 + $0x38] sm:$0xf] %v1483_v40  ;;  %v1495_v46 = vpop.permute.xlu0 %1494  ;;  %2046 = vmatpush1.bf16.msra.mxu1 %v2439_v11 }
 0x4f9   :  { %v1497_v47 = vrot.slane %v1495_v46, 4 }
 0x4fa   :  { %v1459_v8 = vpop.permute.xlu1 %1458 }
 0x4fb   :  { %v1498_v48 = vsel %vm344_vm12, %v1496_v45, %v1497_v47  ;;  %v1500_v51 = vsel %vm3349_vm3, %v1495_v46, %v1497_v47  ;;  %v1462_v55 = vrot.slane %v1459_v8, 4  ;;  %v2543_v46 = vld [vmem:[#allocation5 + $0x98] ss:$24 sps:$4 sm:$0xff]  }
 0x4fc   :  { %v1499_v54 = vsel %vm3350_vm11, %v1493_v41, %v1498_v48  ;;  %1504 = vst [vmem:[#allocation5 + $0x50] sm:$0xf] %v1500_v51  ;;  %v1461_v56 = vpop.permute.xlu0 %1460 }
 0x4fd   :  { %v1463_v49 = vrot.slane %v1461_v56, 4  ;;  %v2433_v50 = vcombine.low %v1482_v43, %v1499_v54  ;;  %v2434_v52 = vcombine.high %v1482_v43, %v1499_v54 }
 0x4fe   :  { %v1832_v59 = vpop.permute.xlu1 %1831 }
 0x4ff   :  { %v1464_v57 = vsel %vm344_vm12, %v1462_v55, %v1463_v49  ;;  %v1466_v58 = vsel %vm3351_vm5, %v1461_v56, %v1463_v49  ;;  %2047 = vmatprep.subr.bf16.mxu1 %v2434_v52  ;;  %v1835_v61 = vrot.slane %v1832_v59, 4 }
 0x500   :  { %v1465_v60 = vsel %vm3352_vm7, %v1459_v8, %v1464_v57  ;;  %1470 = vst [vmem:[#allocation5 + $0x20] sm:$0xf] %v1466_v58  ;;  %v1834_v62 = vpop.permute.xlu0 %1833  ;;  %2048 = vmatpush1.bf16.msra.mxu1 %v2433_v50 }
 0x501   :  { %v1836_v2 = vrot.slane %v1834_v62, 4  ;;  %v2427_v3 = vcombine.low %v3157_v44, %v1465_v60  ;;  %v2428_v4 = vcombine.high %v3157_v44, %v1465_v60 }
 0x502   :  { %v1798_v10 = vpop.permute.xlu1 %1797 }
 0x503   :  { %v1837_v7 = vsel %vm344_vm12, %v1835_v61, %v1836_v2  ;;  %v1839_v9 = vsel %vm563_vm13, %v1834_v62, %v1836_v2  ;;  %2049 = vmatprep.subr.bf16.mxu1 %v2428_v4  ;;  %v1801_v14 = vrot.slane %v1798_v10, 4 }
 0x504   :  { %v1838_v12 = vsel %vm563_vm13, %v1832_v59, %v1837_v7  ;;  %1843 = vst [vmem:[#allocation5 + $0xd4] sm:$0xf] %v1839_v9  ;;  %v1800_v15 = vpop.permute.xlu0 %1799  ;;  %2050 = vmatpush1.bf16.msra.mxu1 %v2427_v3  ;;  %v2549_v3 = vld [vmem:[#allocation5 + $0x68] ss:$24 sps:$4 sm:$0xff]  }
 0x505   :  { %1842 = vst [vmem:[#allocation5 + $0xcc] sm:$0xff] %v1838_v12  ;;  %v1802_v44 = vrot.slane %v1800_v15, 4 }
 0x506   :  { %v1815_v20 = vpop.permute.xlu1 %1814 }
 0x507   :  { %v1803_v18 = vsel %vm344_vm12, %v1801_v14, %v1802_v44  ;;  %v1805_v19 = vsel %vm501_vm15, %v1800_v15, %v1802_v44  ;;  %2458 = vmatmul.mubr.msk.bf16.vlgmr.msra.gmra.mxu1 %vm2013_vm8, %v3252_v16  ;;  %v1818_v17 = vrot.slane %v1815_v20, 4  ;;  %v2555_v44 = vld [vmem:[#allocation5 + $0x38] ss:$24 sps:$4 sm:$0xff]  }
 0x508   :  { %v1804_v21 = vsel %vm501_vm15, %v1798_v10, %v1803_v18  ;;  %1809 = vst [vmem:[#allocation5 + $0xa4] sm:$0xf] %v1805_v19  ;;  %v1817_v22 = vpop.permute.xlu0 %1816  ;;  %2149 = vmatprep.mubr.bf16.mxu1 %v2608_v42  ;;  %vm3357_vm15 = vmmov %vm3351_vm5 }
 0x509   :  { %1808 = vst [vmem:[#allocation5 + $0x9c] sm:$0xff] %v1804_v21  ;;  %v1819_v5 = vrot.slane %v1817_v22, 4  ;;  %v2177_v21 = vld [vmem:[#allocation4 + $0x30] sm:$0x33] }
 0x50a   :  { %v1764_v6 = vpop.permute.xlu1 %1763 }
 0x50b   :  { %v1820_v13 = vsel %vm344_vm12, %v1818_v17, %v1819_v5  ;;  %v1822_v23 = vsel %vm532_vm1, %v1817_v22, %v1819_v5  ;;  %v1767_v24 = vrot.slane %v1764_v6, 4  ;;  %v2179_v17 = vld [vmem:[#allocation4 + $0x40] sm:$0x33] }
 0x50c   :  { %v1821_v63 = vsel %vm532_vm1, %v1815_v20, %v1820_v13  ;;  %1826 = vst [vmem:[#allocation5 + $0xbc] sm:$0xf] %v1822_v23  ;;  %v1766_v53 = vpop.permute.xlu0 %1765  ;;  %v1870_v25 = vld [vmem:[#allocation5 + $0xc8] sm:$0xff]  ;;  %v1871_v26 = vld [vmem:[#allocation5 + $0xd0] sm:$0xff]  ;;  %vm3353_vm1 = vmmov %vm3347_vm2 }
 0x50d   :  { %1825 = vst [vmem:[#allocation5 + $0xb4] sm:$0xff] %v1821_v63  ;;  %v1768_v27 = vrot.slane %v1766_v53, 4  ;;  %v2454_v28 = vcombine.high %v1870_v25, %v1870_v25  ;;  %v2456_v29 = vcombine.high %v1871_v26, %v1871_v26  ;;  %v2453_v30 = vcombine.low %v1870_v25, %v1870_v25  ;;  %vm3354_vm13 = vmmov %vm3353_vm1  ;;  %v2561_v22 = vld [vmem:[#allocation5 + $0x8] ss:$24 sps:$4 sm:$0xff]  }
 0x50e   :  { %v2455_v31 = vcombine.low %v1871_v26, %v1871_v26  ;;  %v1781_v34 = vpop.permute.xlu1 %1780  ;;  %v2463_v63 = vcombine.low %v2177_v21, %v2177_v21  ;;  %v2178_v25 = vld [vmem:[#allocation4 + $0x38] sm:$0x33] }
 0x50f   :  { %v1769_v32 = vsel %vm344_vm12, %v1767_v24, %v1768_v27  ;;  %v1771_v33 = vsel %vm439_vm14, %v1766_v53, %v1768_v27  ;;  %2459 = vmatprep.subr.msk.bf16.mxu0 %vm344_vm12, %v2454_v28  ;;  %2461 = vmatprep.subr.msk.bf16.mxu1 %vm344_vm12, %v2456_v29  ;;  %v2024_v0 = vsel %vm344_vm12, %v2453_v30, 0  ;;  %v1784_v36 = vrot.slane %v1781_v34, 4  ;;  %v2176_v30 = vld [vmem:[%s3309_s8] sm:$0xf]  ;;  %s2625_s8 = smov [#allocation6]  }
 0x510   :  { %v1770_v35 = vsel %vm439_vm14, %v1764_v6, %v1769_v32  ;;  %1775 = vst [vmem:[#allocation5 + $0x74] sm:$0xf] %v1771_v33  ;;  %v1783_v1 = vpop.permute.xlu0 %1782  ;;  %2083 = vmatpush1.bf16.msra.mxu0 %v2024_v0  ;;  %v2030_v37 = vsel %vm344_vm12, %v2455_v31, 0  ;;  %v2464_v6 = vcombine.high %v2177_v21, %v2177_v21  ;;  %v2468_v24 = vcombine.high %v2179_v17, %v2179_v17  ;;  %s2364_s20 = sshll.u32 %s2625_s8, 4  ;;  %s2365_s20 = int_to_ptr.vmem [resolvable:$true] %s2364_s20 }
 0x511   :  { %1774 = vst [vmem:[#allocation5 + $0x6c] sm:$0xff] %v1770_v35  ;;  %v1785_v11 = vrot.slane %v1783_v1, 4  ;;  %2124 = vmatpush1.bf16.msra.mxu1 %v2030_v37  ;;  %v2467_v53 = vcombine.low %v2179_v17, %v2179_v17  ;;  %v2466_v27 = vcombine.high %v2178_v25, %v2178_v25  ;;  %v2465_v29 = vcombine.low %v2178_v25, %v2178_v25  ;;  %s2577_s13 = scalar_lea.vmem %s2365_s20, 768  ;;  %p2582_p1 = scmp.lt.s32.totalorder %s2365_s20, %s2365_s20 }
 0x512   :  { %v1730_v40 = vpop.permute.xlu1 %1729  ;;  %p2578_p0 = scmp.ne.s32.totalorder %s2365_s20, %s2577_s13  ;;  %p2583_p2 = scmp.lt.s32.totalorder %s2577_s13, %s2577_s13 }
 0x513   :  { %v1786_v38 = vsel %vm344_vm12, %v1784_v36, %v1785_v11  ;;  %v1788_v39 = vsel %vm470_vm0, %v1783_v1, %v1785_v11  ;;  %v1733_v43 = vrot.slane %v1730_v40, 4  ;;  %v2548_v8 = vld [vmem:[#allocation5 + $0xa4] ss:$24 sps:$4 sm:$0xff]  }
 0x514   :  { %v1787_v41 = vsel %vm470_vm0, %v1781_v34, %v1786_v38  ;;  %1792 = vst [vmem:[#allocation5 + $0x8c] sm:$0xf] %v1788_v39  ;;  %v1732_v45 = vpop.permute.xlu0 %1731  ;;  %v2545_v47 = vld [vmem:[#allocation5 + $0x9c] ss:$24 sps:$4 sm:$0xff]   ;;  %v2546_v51 = vld [vmem:[#allocation5 + $0xa0] ss:$24 sps:$4 sm:$0xff]   ;;  %2125 = vmatprep.subr.bf16.mxu1 %v2548_v8  ;;  %vm3355_vm0 = vmmov %vm3349_vm3  ;;  %p2584_p3 = por %p2583_p2, %p2582_p1 }
 0x515   :  { %1791 = vst [vmem:[#allocation5 + $0x84] sm:$0xff] %v1787_v41  ;;  %v1734_v48 = vrot.slane %v1732_v45, 4  ;;  %2084 = vmatprep.subr.bf16.mxu0 %v2545_v47  ;;  %2126 = vmatpush1.bf16.msra.mxu1 %v2546_v51  ;;  %vm3356_vm14 = vmmov %vm3355_vm0  ;;  %vm2201_vm3 = vcmask 31744  }
 0x516   :  { %v1747_v56 = vpop.permute.xlu1 %1746  ;;  %2085 = vmatpush1.bf16.msra.mxu0 %v2543_v46  ;;  %p2585_p4 = pnand %p2584_p3, %p2578_p0 }
 0x517   :  { %v1735_v54 = vsel %vm344_vm12, %v1733_v43, %v1734_v48  ;;  %v1737_v55 = vsel %vm3353_vm1, %v1732_v45, %v1734_v48  ;;  %v1750_v50 = vrot.slane %v1747_v56, 4 }
 0x518   :  { %v1736_v49 = vsel %vm3354_vm13, %v1730_v40, %v1735_v54  ;;  %1741 = vst [vmem:[#allocation5 + $0x44] sm:$0xf] %v1737_v55  ;;  %v1749_v52 = vpop.permute.xlu0 %1748 }
 0x519   :  { %1740 = vst [vmem:[#allocation5 + $0x3c] sm:$0xff] %v1736_v49  ;;  %v1751_v57 = vrot.slane %v1749_v52, 4 }
 0x51a   :  { %v1713_v60 = vpop.permute.xlu1 %1712 }
 0x51b   :  { %v1752_v58 = vsel %vm344_vm12, %v1750_v50, %v1751_v57  ;;  %v1754_v59 = vsel %vm3355_vm0, %v1749_v52, %v1751_v57  ;;  %v1716_v62 = vrot.slane %v1713_v60, 4  ;;  %v2554_v10 = vld [vmem:[#allocation5 + $0x74] ss:$24 sps:$4 sm:$0xff]  }
 0x51c   :  { %v1753_v61 = vsel %vm3356_vm14, %v1747_v56, %v1752_v58  ;;  %1758 = vst [vmem:[#allocation5 + $0x5c] sm:$0xf] %v1754_v59  ;;  %v1715_v2 = vpop.permute.xlu0 %1714  ;;  %v2551_v4 = vld [vmem:[#allocation5 + $0x6c] ss:$24 sps:$4 sm:$0xff]   ;;  %v2552_v9 = vld [vmem:[#allocation5 + $0x70] ss:$24 sps:$4 sm:$0xff]   ;;  %2127 = vmatprep.subr.bf16.mxu1 %v2554_v10 }
 0x51d   :  { %1757 = vst [vmem:[#allocation5 + $0x54] sm:$0xff] %v1753_v61  ;;  %v1717_v7 = vrot.slane %v1715_v2, 4  ;;  %2086 = vmatprep.subr.bf16.mxu0 %v2551_v4  ;;  %2128 = vmatpush1.bf16.msra.mxu1 %v2552_v9 }
 0x51e   :  { %2087 = vmatpush1.bf16.msra.mxu0 %v2549_v3 }
 0x51f   :  { %v1718_v12 = vsel %vm344_vm12, %v1716_v62, %v1717_v7  ;;  %v1720_v14 = vsel %vm3357_vm15, %v1715_v2, %v1717_v7  ;;  %vm3359_vm12 = vcmask 1041408  }
 0x520   :  { %v1719_v15 = vsel %vm3358_vm6, %v1713_v60, %v1718_v12  ;;  %1724 = vst [vmem:[#allocation5 + $0x2c] sm:$0xf] %v1720_v14  ;;  %vm3360_vm10 = vmmov %vm3359_vm12 }
 0x521   :  { %1723 = vst [vmem:[#allocation5 + $0x24] sm:$0xff] %v1719_v15  ;;  %vm3361_vm4 = vmmov %vm3360_vm10 }
 0x522   :  { %v2206_v26 = vsel %vm3361_vm4, %v2463_v63, 0  ;;  %vm3362_vm2 = vmmov %vm3361_vm4 }
 0x523   :  { %v2560_v20 = vld [vmem:[#allocation5 + $0x44] ss:$24 sps:$4 sm:$0xff]   ;;  %v2218_v28 = vsel %vm3362_vm2, %v2467_v53, 0  ;;  %vm3363_vm9 = vmmov %vm3362_vm2 }
 0x524   :  { %v2557_v18 = vld [vmem:[#allocation5 + $0x3c] ss:$24 sps:$4 sm:$0xff]   ;;  %v2558_v19 = vld [vmem:[#allocation5 + $0x40] ss:$24 sps:$4 sm:$0xff]   ;;  %2129 = vmatprep.subr.bf16.mxu1 %v2560_v20  ;;  %vm3364_vm11 = vmmov %vm3362_vm2 }
 0x525   :  { %2088 = vmatprep.subr.bf16.mxu0 %v2557_v18  ;;  %2130 = vmatpush1.bf16.msra.mxu1 %v2558_v19  ;;  %v2212_v31 = vsel %vm3364_vm11, %v2465_v29, 0 }
 0x526   :  { %2089 = vmatpush1.bf16.msra.mxu0 %v2555_v44 }
 0x527   :  { %v2566_v23 = vld [vmem:[#allocation5 + $0x14] ss:$24 sps:$4 sm:$0xff]   ;;  %v1876_v35 = vpop.permute.xlu1 %1875 }
 0x528   :  { %v2563_v5 = vld [vmem:[#allocation5 + $0xc] ss:$24 sps:$4 sm:$0xff]   ;;  %v2564_v13 = vld [vmem:[#allocation5 + $0x10] ss:$24 sps:$4 sm:$0xff]   ;;  %2131 = vmatprep.subr.bf16.mxu1 %v2566_v23 }
 0x529   :  { %2090 = vmatprep.subr.bf16.mxu0 %v2563_v5  ;;  %2132 = vmatpush1.bf16.msra.mxu1 %v2564_v13  ;;  %v2184_v48 = vpop.permute.xlu0 %2183 }
 0x52a   :  { %2091 = vmatpush1.bf16.msra.mxu0 %v2561_v22  ;;  %2473 = vmatprep.subr.msk.bf16.mxu1 %vm3360_vm10, %v2468_v24 }
 0x52b   :  { %2469 = vmatprep.subr.msk.bf16.mxu0 %vm3359_vm12, %v2464_v6 }
 0x52c   :  { %2462 = vmatmul.mubr.msk.bf16.vlgmr.msra.gmra.mxu1 %vm2013_vm8, %v3252_v16 }
 0x52d   :  { %2460 = vmatmul.mubr.msk.bf16.vlgmr.msra.gmra.mxu0 %vm2013_vm8, %v3252_v16  ;;  %2320 = vmatpush1.bf16.msra.mxu1 %v2218_v28 }
 0x52e   :  { %2238 = vmatpush1.bf16.msra.mxu0 %v2206_v26  ;;  %2255 = vmatprep.mubr.bf16.mxu0 %v2608_v42 }
 0x52f   :  { %2471 = vmatprep.subr.msk.bf16.mxu0 %vm3363_vm9, %v2466_v27  ;;  %2337 = vmatprep.mubr.bf16.mxu1 %v2608_v42 }
 0x534   :  { %2474 = vmatmul.mubr.msk.bf16.vlgmr.msra.gmra.mxu1 %vm2201_vm3, %v2176_v30 }
 0x535   :  { %2470 = vmatmul.mubr.msk.bf16.vlgmr.msra.gmra.mxu0 %vm2201_vm3, %v2176_v30 }
 0x536   :  { %2279 = vmatpush1.bf16.msra.mxu0 %v2212_v31  ;;  %2296 = vmatprep.mubr.bf16.mxu0 %v2608_v42 }
 0x53d   :  { %2472 = vmatmul.mubr.msk.bf16.vlgmr.msra.gmra.mxu0 %vm2201_vm3, %v2176_v30 }
 0x5c7   :  { %v2069_v16 = vpop.f32.mrf.mxu1 }
 0x5c8   :  { %v2070_v1 = vadd.f32 %v2069_v16, %v1876_v35 }
 0x5c9   :  { %v2071_v32 = vpop.f32.mrf.mxu1 }
 0x5ca   :  { %v2072_v39 = vadd.f32 %v2071_v32, %v1876_v35  ;;  %v2164_v45 = vmul.f32 0.1, %v2070_v1  ;;  %vm2158_vm5 = vcmp.ge.f32.partialorder %v2070_v1, 0.0 }
 0x5cb   :  { %v2073_v33 = vpop.f32.mrf.mxu1 }
 0x5cc   :  { %v2165_v51 = vmul.f32 0.1, %v2072_v39  ;;  %vm2159_vm8 = vcmp.ge.f32.partialorder %v2072_v39, 0.0  ;;  %v2170_v50 = vsel %vm2158_vm5, %v2070_v1, %v2164_v45 }
 0x5cd   :  { %v2074_v34 = vpop.f32.mrf.mxu1 }
 0x5ce   :  { %v2171_v3 = vsel %vm2159_vm8, %v2072_v39, %v2165_v51 }
 0x5ec   :  { %v2151_v36 = vpop.f32.mrf.mxu1 }
 0x5ed   :  { %v2110_v0 = vpop.f32.mrf.mxu0  ;;  %v2152_v11 = vadd.f32 %v2151_v36, %v1876_v35 }
 0x5ee   :  { %v2153_v38 = vpop.f32.mrf.mxu1  ;;  %v2111_v49 = vadd.f32 %v2110_v0, %v1876_v35 }
 0x5ef   :  { %v2112_v37 = vpop.f32.mrf.mxu0  ;;  %v2154_v41 = vadd.f32 %v2153_v38, %v1876_v35  ;;  %v2168_v42 = vmul.f32 0.1, %v2152_v11  ;;  %vm2162_vm7 = vcmp.ge.f32.partialorder %v2152_v11, 0.0 }
 0x5f0   :  { %v2155_v43 = vpop.f32.mrf.mxu1  ;;  %v2113_v62 = vadd.f32 %v2112_v37, %v1876_v35  ;;  %v2166_v14 = vmul.f32 0.1, %v2111_v49  ;;  %vm2160_vm13 = vcmp.ge.f32.partialorder %v2111_v49, 0.0 }
 0x5f1   :  { %v2114_v40 = vpop.f32.mrf.mxu0  ;;  %v2169_v54 = vmul.f32 0.1, %v2154_v41  ;;  %vm2163_vm1 = vcmp.ge.f32.partialorder %v2154_v41, 0.0  ;;  %v2174_v59 = vsel %vm2162_vm7, %v2152_v11, %v2168_v42 }
 0x5f2   :  { %v2156_v47 = vpop.f32.mrf.mxu1  ;;  %v2167_v19 = vmul.f32 0.1, %v2113_v62  ;;  %vm2161_vm0 = vcmp.ge.f32.partialorder %v2113_v62, 0.0  ;;  %v2172_v17 = vsel %vm2160_vm13, %v2111_v49, %v2166_v14 }
 0x5f3   :  { %v2115_v46 = vpop.f32.mrf.mxu0  ;;  %v2175_v10 = vsel %vm2163_vm1, %v2154_v41, %v2169_v54 }
 0x5f4   :  { %v2339_v56 = vpop.f32.mrf.mxu1  ;;  %v2173_v23 = vsel %vm2161_vm0, %v2113_v62, %v2167_v19 }
 0x5f5   :  { %v2257_v8 = vpop.f32.mrf.mxu0  ;;  %v2340_v52 = vadd.f32 %v2339_v56, %v2184_v48 }
 0x5f6   :  { %v2258_v55 = vadd.f32 %v2257_v8, %v2184_v48  ;;  %v2341_v61 = vpop.f32.mrf.mxu1 }
 0x5f7   :  { %v2259_v57 = vpop.f32.mrf.mxu0  ;;  %v2350_v2 = vadd.f32 %v2340_v52, %v2174_v59  ;;  %v2342_v4 = vadd.f32 %v2341_v61, %v2184_v48 }
 0x5f8   :  { %v2346_v58 = vadd.f32 %v2258_v55, %v2170_v50  ;;  %v2260_v60 = vadd.f32 %v2259_v57, %v2184_v48  ;;  %v2343_v12 = vpop.f32.mrf.mxu1 }
 0x5f9   :  { %v2261_v7 = vpop.f32.mrf.mxu0  ;;  %2357 = vst [vmem:[#allocation6 + $0x20] sm:$0xff] %v2350_v2  ;;  %v2351_v15 = vadd.f32 %v2342_v4, %v2175_v10 }
 0x5fa   :  { %2352 = vst [vmem:[#allocation6] sm:$0xff] %v2346_v58  ;;  %v2347_v9 = vadd.f32 %v2260_v60, %v2171_v3  ;;  %v2344_v18 = vpop.f32.mrf.mxu1 }
 0x5fb   :  { %v2262_v44 = vpop.f32.mrf.mxu0  ;;  %2358 = vst [vmem:[#allocation6 + $0x28] sm:$0xff] %v2351_v15 }
 0x5fc   :  { %2353 = vst [vmem:[#allocation6 + $0x8] sm:$0xff] %v2347_v9 }
 0x5fd   :  { %v2298_v20 = vpop.f32.mrf.mxu0 }
 0x5fe   :  { %v2299_v21 = vadd.f32 %v2298_v20, %v2184_v48 }
 0x5ff   :  { %v2300_v22 = vpop.f32.mrf.mxu0 }
 0x600   :  { %v2348_v5 = vadd.f32 %v2299_v21, %v2172_v17  ;;  %v2301_v13 = vadd.f32 %v2300_v22, %v2184_v48 }
 0x601   :  { %v2302_v6 = vpop.f32.mrf.mxu0 }
 0x602   :  { %2354 = vst [vmem:[#allocation6 + $0x10] sm:$0xff] %v2348_v5  ;;  %v2349_v63 = vadd.f32 %v2301_v13, %v2173_v23 }
 0x603   :  { %v2303_v24 = vpop.f32.mrf.mxu0 }
 0x604   :  { %2356 = vst [vmem:[#allocation6 + $0x18] sm:$0xff] %v2349_v63 }
 0x605   :  { %2588 = shalt.err (!%p2585_p4)
}
 0x606   :  { %s2626_s14 = smov 384   ;;  %s2627_s0 = smov 24  }
 0x607   :  { %2370 = dma.vmem_to_hbm [thread:$0]  %s2365_s20, 768, %s3311_s10, [#allocation7], %s2626_s14, %s2626_s14, %s2627_s0  }
 0x608   :  { %2597 = dma.done.wait [#allocation7], 768  }
 0x609   :  { %2598 = vsyncadd [#allocation7], 4294966528 }
 0x60a   :  { %2374 = vsyncpa [#allocation7], 1 }

</bundles_post_ra>
